<compile_context>
chip_gen: v6e
topology: v6e:2x2x1
jax: 0.10.0
libtpu: 0.0.40
codegen_flags: <defaults>
</compile_context>

<pallas_src>
import functools
import math

import jax
import jax.numpy as jnp
from jax.experimental import pallas as pl
from jax.experimental.pallas import tpu as pltpu

EPS = 1e-5                       # Whisper LayerNorm eps


def _vmem_limit_bytes():
    # Generation-aware scoped-VMEM limit: ~48 MiB on v5e/v6e (128 MiB physical),
    # ~38 MiB on v7x (64 MiB physical) to leave compiler-scratch headroom.
    try:
        cap = int(pltpu.get_tpu_info().vmem_capacity_bytes)
    except Exception:  # not on TPU / API unavailable -> conservative default
        cap = 128 * 1024 * 1024
    return min(48 * 1024 * 1024, max(16 * 1024 * 1024, (cap * 3) // 5))


_VMEM_LIMIT = _vmem_limit_bytes()


# ----------------------------------------------------------------------------
# small in-kernel helpers
# ----------------------------------------------------------------------------
def _gelu(x):
    # TODO(synk): HF Whisper uses exact erf-GELU; tanh approximation used here.
    c = math.sqrt(2.0 / math.pi)
    return 0.5 * x * (1.0 + jnp.tanh(c * (x + 0.044715 * x * x * x)))


def _layernorm(x, w, b):
    mu = jnp.mean(x, axis=-1, keepdims=True)
    var = jnp.mean((x - mu) ** 2, axis=-1, keepdims=True)
    return (x - mu) * jax.lax.rsqrt(var + EPS) * w + b


# ----------------------------------------------------------------------------
# kernel 1: conv-stem as im2col matmul + bias + GELU, tiled over rows (M)
# ----------------------------------------------------------------------------
def _matmul_bias_gelu_kernel(x_ref, w_ref, b_ref, o_ref):
    y = jnp.dot(x_ref[...].astype(jnp.bfloat16), w_ref[...],
                preferred_element_type=jnp.float32)
    o_ref[...] = _gelu(y + b_ref[...]).astype(o_ref.dtype)


def matmul_bias_gelu(x, w, b, *, tm=1024):
    """bf16-in / bf16-out row-tiled matmul + bias + GELU (f32 accumulation)."""
    M, K = x.shape
    _, N = w.shape
    tm = min(tm, M)
    return pl.pallas_call(
        _matmul_bias_gelu_kernel,
        out_shape=jax.ShapeDtypeStruct((M, N), jnp.bfloat16),
        grid=(pl.cdiv(M, tm),),
        in_specs=[
            pl.BlockSpec((tm, K), lambda i: (i, 0)),
            pl.BlockSpec((K, N), lambda i: (0, 0)),
            pl.BlockSpec((1, N), lambda i: (0, 0)),
        ],
        out_specs=pl.BlockSpec((tm, N), lambda i: (i, 0)),
        compiler_params=pltpu.CompilerParams(
            dimension_semantics=("parallel",),
            vmem_limit_bytes=_VMEM_LIMIT),
    )(x.astype(jnp.bfloat16), w.astype(jnp.bfloat16),
      b.reshape(1, N).astype(jnp.float32))


# ----------------------------------------------------------------------------
# kernel 2: fused encoder stack (all layers) + pos-emb add + final LN +
#           mean-pool + fc + sigmoid.
# grid = (B, L); the (T, D) activation lives in a VMEM scratch across layers.
# NOTE: correctness relies on L being the innermost ("arbitrary") grid axis so
# the per-core scratch is re-initialized at l==0 for every batch item; do not
# reorder the grid or mark L "parallel".
# ----------------------------------------------------------------------------
def _encoder_stack_kernel(x_ref, pos_ref,
                          ln1w_ref, ln1b_ref, wqkv_ref, bqkv_ref,
                          wo_ref, bo_ref, ln2w_ref, ln2b_ref,
                          fc1w_ref, fc1b_ref, fc2w_ref, fc2b_ref,
                          lnfw_ref, lnfb_ref, fcw_ref, fcb_ref,
                          o_ref, x_acc, *, n_heads):
    l = pl.program_id(1)
    n_layers = pl.num_programs(1)

    @pl.when(l == 0)
    def _():
        # pos-emb add fused here: no separate HBM pass over (B, T, D).
        x_acc[...] = x_ref[0].astype(jnp.float32) + pos_ref[...]

    x = x_acc[...]                          # (T, D) f32, resident across layers
    T, D = x.shape
    dh = D // n_heads

    # ---- self-attention -----------------------------------------------------
    # Single full-width QKV matmul (q scale already folded into wq/bq).
    xn = _layernorm(x, ln1w_ref[0], ln1b_ref[0]).astype(jnp.bfloat16)
    qkv = jnp.dot(xn, wqkv_ref[0],
                  preferred_element_type=jnp.float32) + bqkv_ref[0]   # (T, 3D)

    def split_heads(m):                     # (T, D) bf16 -> (H, T, dh)
        return jnp.stack([m[:, h * dh:(h + 1) * dh] for h in range(n_heads)],
                         axis=0)

    qh = split_heads(qkv[:, :D].astype(jnp.bfloat16))
    kh = split_heads(qkv[:, D:2 * D].astype(jnp.bfloat16))   # k_proj: no bias
    vh = split_heads(qkv[:, 2 * D:].astype(jnp.bfloat16))

    # TODO(synk): at real Whisper lengths (T~1500) the (H, T, T) scores must be
    # KV-tiled with an online (flash-style) softmax to stay within VMEM.
    s = jnp.einsum("hqe,hke->hqk", qh, kh, preferred_element_type=jnp.float32)
    s = s - jnp.max(s, axis=-1, keepdims=True)
    e = jnp.exp(s)
    p = e * pl.reciprocal(jnp.sum(e, axis=-1, keepdims=True), approx=True)
    ctx = jnp.einsum("hqk,hke->hqe", p.astype(jnp.bfloat16), vh,
                     preferred_element_type=jnp.float32)      # (H, T, dh)

    # Merge heads back to (T, D) and apply ONE (T,D)@(D,D) output projection;
    # the per-head sum is absorbed into the contraction.
    ctx2d = jnp.concatenate([ctx[h] for h in range(n_heads)],
                            axis=-1).astype(jnp.bfloat16)     # (T, D)
    x = x + jnp.dot(ctx2d, wo_ref[0],
                    preferred_element_type=jnp.float32) + bo_ref[0]

    # ---- MLP ------------------------------------------------------------------
    xn2 = _layernorm(x, ln2w_ref[0], ln2b_ref[0]).astype(jnp.bfloat16)
    h1 = _gelu(jnp.dot(xn2, fc1w_ref[0],
                       preferred_element_type=jnp.float32) + fc1b_ref[0])
    x = x + jnp.dot(h1.astype(jnp.bfloat16), fc2w_ref[0],
                    preferred_element_type=jnp.float32) + fc2b_ref[0]

    x_acc[...] = x

    # ---- final LN + mean pool over time + fc + sigmoid, fused on last layer ----
    @pl.when(l == n_layers - 1)
    def _():
        xf = _layernorm(x, lnfw_ref[...], lnfb_ref[...])
        pooled = jnp.mean(xf, axis=0, keepdims=True)          # (1, D)
        # fc weight padded to 128 lanes host-side -> lane-dense matmul/store.
        logit = jnp.dot(pooled, fcw_ref[...],
                        preferred_element_type=jnp.float32) + fcb_ref[...]
        o_ref[0] = jax.nn.sigmoid(logit)                      # (1, 128); lane 0 used


def encoder_stack_and_head(x, pos_emb, layer_stack, ln_f_w, ln_f_b,
                           fc_w, fc_b, n_heads):
    B, T, D = x.shape
    L = layer_stack[0].shape[0]
    head_args = [ln_f_w, ln_f_b, fc_w, fc_b]

    def stacked_spec(a):
        nrest = a.ndim - 1
        return pl.BlockSpec((1,) + a.shape[1:], lambda b, l: (l,) + (0,) * nrest)

    def shared_spec(a):
        zeros = (0,) * a.ndim
        return pl.BlockSpec(a.shape, lambda b, l: zeros)

    in_specs = ([pl.BlockSpec((1, T, D), lambda b, l: (b, 0, 0)),
                 shared_spec(pos_emb)]
                + [stacked_spec(a) for a in layer_stack]
                + [shared_spec(a) for a in head_args])

    out = pl.pallas_call(
        functools.partial(_encoder_stack_kernel, n_heads=n_heads),
        out_shape=jax.ShapeDtypeStruct((B, 1, 128), jnp.float32),
        grid=(B, L),
        in_specs=in_specs,
        out_specs=pl.BlockSpec((1, 1, 128), lambda b, l: (b, 0, 0)),
        scratch_shapes=[pltpu.VMEM((T, D), jnp.float32)],
        compiler_params=pltpu.CompilerParams(
            dimension_semantics=("parallel", "arbitrary"),
            vmem_limit_bytes=_VMEM_LIMIT),
    )(x, pos_emb, *layer_stack, *head_args)
    return out[:, 0, 0]


# ----------------------------------------------------------------------------
# JAX glue: im2col, parameter init, host-side parameter packing, full forward
# ----------------------------------------------------------------------------
def im2col_1d(x_btc, kernel=3, stride=1, pad=1):
    """x_btc: (B, T, C) channels-last.  Returns (B*T_out, C*kernel), T_out."""
    # TODO(synk): an in-kernel halo/3-tap conv would avoid the 3x im2col copy in
    # HBM; kept host-side for simplicity at these shapes (stem is tiny here).
    B, T, C = x_btc.shape
    xp = jnp.pad(x_btc, ((0, 0), (pad, pad), (0, 0)))
    T_out = (T + 2 * pad - kernel) // stride + 1
    cols = [xp[:, k:k + stride * T_out:stride, :] for k in range(kernel)]
    u = jnp.stack(cols, axis=-1)                           # (B, T_out, C, K)
    return u.reshape(B * T_out, C * kernel), T_out


def init_params(key, n_mels, d_model, n_layers, ffn, t_out):
    ks = iter(jax.random.split(key, 128))

    def w(shape, scale=0.02):
        return scale * jax.random.normal(next(ks), shape, jnp.float32)

    params = dict(
        conv1_w=w((d_model, n_mels, 3)), conv1_b=w((d_model,)),
        conv2_w=w((d_model, d_model, 3)), conv2_b=w((d_model,)),
        pos_emb=w((t_out, d_model)),
        ln_f_w=jnp.ones((d_model,), jnp.float32),
        ln_f_b=jnp.zeros((d_model,), jnp.float32),
        fc_w=w((d_model, 1)), fc_b=w((1,)),
        layers=[],
    )
    for _ in range(n_layers):
        params["layers"].append(dict(
            ln1_w=jnp.ones((d_model,), jnp.float32),
            ln1_b=jnp.zeros((d_model,), jnp.float32),
            wq=w((d_model, d_model)), bq=w((d_model,)),
            wk=w((d_model, d_model)),                       # Whisper k_proj: bias=False
            wv=w((d_model, d_model)), bv=w((d_model,)),
            wo=w((d_model, d_model)), bo=w((d_model,)),
            ln2_w=jnp.ones((d_model,), jnp.float32),
            ln2_b=jnp.zeros((d_model,), jnp.float32),
            fc1_w=w((d_model, ffn)), fc1_b=w((ffn,)),
            fc2_w=w((ffn, d_model)), fc2_b=w((d_model,)),
        ))
    return params


def prepare_params(params, n_heads):
    """Stack per-layer weights along L, fuse QKV into (D,3D) with the q scale
    folded into wq/bq, keep wo as (D,D), cast matmul weights to bf16, pad the
    classifier head to 128 lanes."""
    D = params["conv1_w"].shape[0]
    assert D % n_heads == 0
    dh = D // n_heads
    scale = dh ** -0.5                       # Whisper scales q by head_dim**-0.5
    layers = params["layers"]
    F = layers[0]["fc1_w"].shape[1]

    def per_layer(lp):
        wqkv = jnp.concatenate([lp["wq"] * scale, lp["wk"], lp["wv"]], axis=1)  # (D,3D)
        bqkv = jnp.concatenate([lp["bq"] * scale,
                                jnp.zeros((D,), jnp.float32),   # k_proj has no bias
                                lp["bv"]]).reshape(1, 3 * D)
        return [
            lp["ln1_w"].reshape(1, D), lp["ln1_b"].reshape(1, D),
            wqkv.astype(jnp.bfloat16), bqkv,
            lp["wo"].astype(jnp.bfloat16), lp["bo"].reshape(1, D),
            lp["ln2_w"].reshape(1, D), lp["ln2_b"].reshape(1, D),
            lp["fc1_w"].astype(jnp.bfloat16), lp["fc1_b"].reshape(1, F),
            lp["fc2_w"].astype(jnp.bfloat16), lp["fc2_b"].reshape(1, D),
        ]

    per = [per_layer(lp) for lp in layers]
    layer_stack = [jnp.stack([p[i] for p in per], axis=0) for i in range(len(per[0]))]

    fc_w = jnp.zeros((D, 128), jnp.float32).at[:, :1].set(params["fc_w"])
    fc_b = jnp.zeros((1, 128), jnp.float32).at[:, :1].set(params["fc_b"].reshape(1, 1))

    return dict(
        conv1_w=params["conv1_w"].reshape(D, -1).T.astype(jnp.bfloat16),
        conv1_b=params["conv1_b"],
        conv2_w=params["conv2_w"].reshape(D, -1).T.astype(jnp.bfloat16),
        conv2_b=params["conv2_b"],
        pos_emb=params["pos_emb"],
        layer_stack=layer_stack,
        ln_f_w=params["ln_f_w"].reshape(1, D),
        ln_f_b=params["ln_f_b"].reshape(1, D),
        fc_w=fc_w, fc_b=fc_b,
    )


def whisper_classifier_forward(prepared, input_features, n_heads):
    """input_features: (B, n_mels, T_in) — PyTorch Conv1d NCT layout."""
    d_model = prepared["conv1_w"].shape[1]
    x = jnp.transpose(input_features, (0, 2, 1))            # -> (B, T, n_mels)
    B = x.shape[0]

    # conv1 (k=3, stride=1, pad=1) + GELU   (bf16 activations through the stem)
    u1, t1 = im2col_1d(x, kernel=3, stride=1, pad=1)
    h1 = matmul_bias_gelu(u1, prepared["conv1_w"], prepared["conv1_b"])
    h1 = h1.reshape(B, t1, d_model)

    # conv2 (k=3, stride=2, pad=1) + GELU
    u2, t2 = im2col_1d(h1, kernel=3, stride=2, pad=1)
    h2 = matmul_bias_gelu(u2, prepared["conv2_w"], prepared["conv2_b"])
    h2 = h2.reshape(B, t2, d_model)

    assert t2 == prepared["pos_emb"].shape[0], "pos_emb length mismatch"

    # fused: pos-emb add + encoder stack + final LN + mean pool + fc + sigmoid
    return encoder_stack_and_head(
        h2, prepared["pos_emb"], prepared["layer_stack"],
        prepared["ln_f_w"], prepared["ln_f_b"],
        prepared["fc_w"], prepared["fc_b"], n_heads)


# ----------------------------------------------------------------------------
if __name__ == "__main__":
    B, N_MELS, T_IN = 2, 8, 16
    D_MODEL, N_HEADS, N_LAYERS, FFN = 32, 4, 2, 64
    T_OUT = T_IN // 2                                        # after stride-2 conv2

    key = jax.random.PRNGKey(0)
    pkey, xkey = jax.random.split(key)
    # TODO(synk): WhisperModel.from_pretrained loads a checkpoint; weights here
    # are deterministic synthetic initializations with the same structure.
    params = init_params(pkey, N_MELS, D_MODEL, N_LAYERS, FFN, T_OUT)
    prepared = prepare_params(params, N_HEADS)
    input_features = jax.random.normal(xkey, (B, N_MELS, T_IN), jnp.float32)

    fwd = jax.jit(functools.partial(whisper_classifier_forward, n_heads=N_HEADS))
    out = jax.block_until_ready(fwd(prepared, input_features))
    assert out.shape == (B,)
    assert bool(jnp.all(jnp.isfinite(out)))
    assert bool(jnp.all((out >= 0.0) & (out <= 1.0)))
    print("KERNEL_OK")
</pallas_src>

<mosaic_0001>
module attributes {stable_mosaic.version = 11 : i64} {
  func.func @_matmul_bias_gelu_kernel(%arg0: i32, %arg1: memref<32x24xbf16, #tpu.memory_space<vmem>>, %arg2: memref<24x32xbf16, #tpu.memory_space<vmem>>, %arg3: memref<1x32xf32, #tpu.memory_space<vmem>>, %arg4: memref<32x32xbf16, #tpu.memory_space<vmem>>) attributes {dimension_semantics = [#tpu.dimension_semantics<parallel>], iteration_bounds = array<i64: 1>, scalar_prefetch = 0 : i64, scratch_operands = 0 : i64, tpu.core_type = #tpu.core_type<tc>, window_params = [{transform_indices = @transform_0, window_bounds = array<i64: 32, 24>}, {pipeline_mode = #tpu.pipeline_mode<synchronous>, transform_indices = @transform_1, window_bounds = array<i64: 24, 32>}, {pipeline_mode = #tpu.pipeline_mode<synchronous>, transform_indices = @transform_2, window_bounds = array<i64: 1, 32>}, {transform_indices = @transform_3, window_bounds = array<i64: 32, 32>}]} {
    %c0 = arith.constant 0 : index
    %c0_0 = arith.constant 0 : index
    %0 = vector.load %arg1[%c0, %c0_0] : memref<32x24xbf16, #tpu.memory_space<vmem>>, vector<32x24xbf16>
    %c0_1 = arith.constant 0 : index
    %c0_2 = arith.constant 0 : index
    %1 = vector.load %arg2[%c0_1, %c0_2] : memref<24x32xbf16, #tpu.memory_space<vmem>>, vector<24x32xbf16>
    %cst = arith.constant dense<0.000000e+00> : vector<32x32xf32>
    %2 = tpu.matmul %0, %1, %cst {dimension_numbers = #tpu.dot_dimension_numbers<[1], [0], [0], [1], [0, 0, 1, 1], [], []>} : vector<32x24xbf16>, vector<24x32xbf16>, vector<32x32xf32> -> vector<32x32xf32>
    %c0_3 = arith.constant 0 : index
    %c0_4 = arith.constant 0 : index
    %3 = vector.load %arg3[%c0_3, %c0_4] : memref<1x32xf32, #tpu.memory_space<vmem>>, vector<1x32xf32>
    %4 = vector.broadcast %3 : vector<1x32xf32> to vector<32x32xf32>
    %5 = arith.addf %2, %4 : vector<32x32xf32>
    %cst_5 = arith.constant 5.000000e-01 : f32
    %6 = vector.broadcast %cst_5 : f32 to vector<32x32xf32>
    %7 = arith.mulf %6, %5 : vector<32x32xf32>
    %cst_6 = arith.constant 4.471500e-02 : f32
    %8 = vector.broadcast %cst_6 : f32 to vector<32x32xf32>
    %9 = arith.mulf %8, %5 : vector<32x32xf32>
    %10 = arith.mulf %9, %5 : vector<32x32xf32>
    %11 = arith.mulf %10, %5 : vector<32x32xf32>
    %12 = arith.addf %5, %11 : vector<32x32xf32>
    %cst_7 = arith.constant 0.797884583 : f32
    %13 = vector.broadcast %cst_7 : f32 to vector<32x32xf32>
    %14 = arith.mulf %13, %12 : vector<32x32xf32>
    %15 = math.tanh %14 : vector<32x32xf32>
    %cst_8 = arith.constant 1.000000e+00 : f32
    %16 = vector.broadcast %cst_8 : f32 to vector<32x32xf32>
    %17 = arith.addf %16, %15 : vector<32x32xf32>
    %18 = arith.mulf %7, %17 : vector<32x32xf32>
    %19 = arith.truncf %18 : vector<32x32xf32> to vector<32x32xbf16>
    %c0_9 = arith.constant 0 : index
    %c0_10 = arith.constant 0 : index
    %20 = vector.load %arg4[%c0_9, %c0_10] : memref<32x32xbf16, #tpu.memory_space<vmem>>, vector<32x32xbf16>
    tpu.vector_store %arg4[%c0_9, %c0_10], %19 {strides = array<i32>} : memref<32x32xbf16, #tpu.memory_space<vmem>>, vector<32x32xbf16>,
    return
  }
  func.func @transform_0(%arg0: i32) -> (i32, i32) {
    %c0_i32 = arith.constant 0 : i32
    %c0_i32_0 = arith.constant 0 : i32
    return %arg0, %c0_i32 : i32, i32
  }
  func.func @transform_1(%arg0: i32) -> (i32, i32) {
    %c0_i32 = arith.constant 0 : i32
    %c0_i32_0 = arith.constant 0 : i32
    %c0_i32_1 = arith.constant 0 : i32
    return %c0_i32, %c0_i32_0 : i32, i32
  }
  func.func @transform_2(%arg0: i32) -> (i32, i32) {
    %c0_i32 = arith.constant 0 : i32
    %c0_i32_0 = arith.constant 0 : i32
    %c0_i32_1 = arith.constant 0 : i32
    return %c0_i32, %c0_i32_0 : i32, i32
  }
  func.func @transform_3(%arg0: i32) -> (i32, i32) {
    %c0_i32 = arith.constant 0 : i32
    %c0_i32_0 = arith.constant 0 : i32
    return %arg0, %c0_i32 : i32, i32
  }
}

module attributes {stable_mosaic.version = 11 : i64} {
  func.func @_matmul_bias_gelu_kernel(%arg0: i32, %arg1: memref<16x96xbf16, #tpu.memory_space<vmem>>, %arg2: memref<96x32xbf16, #tpu.memory_space<vmem>>, %arg3: memref<1x32xf32, #tpu.memory_space<vmem>>, %arg4: memref<16x32xbf16, #tpu.memory_space<vmem>>) attributes {dimension_semantics = [#tpu.dimension_semantics<parallel>], iteration_bounds = array<i64: 1>, scalar_prefetch = 0 : i64, scratch_operands = 0 : i64, tpu.core_type = #tpu.core_type<tc>, window_params = [{transform_indices = @transform_0, window_bounds = array<i64: 16, 96>}, {pipeline_mode = #tpu.pipeline_mode<synchronous>, transform_indices = @transform_1, window_bounds = array<i64: 96, 32>}, {pipeline_mode = #tpu.pipeline_mode<synchronous>, transform_indices = @transform_2, window_bounds = array<i64: 1, 32>}, {transform_indices = @transform_3, window_bounds = array<i64: 16, 32>}]} {
    %c0 = arith.constant 0 : index
    %c0_0 = arith.constant 0 : index
    %0 = vector.load %arg1[%c0, %c0_0] : memref<16x96xbf16, #tpu.memory_space<vmem>>, vector<16x96xbf16>
    %c0_1 = arith.constant 0 : index
    %c0_2 = arith.constant 0 : index
    %1 = vector.load %arg2[%c0_1, %c0_2] : memref<96x32xbf16, #tpu.memory_space<vmem>>, vector<96x32xbf16>
    %cst = arith.constant dense<0.000000e+00> : vector<16x32xf32>
    %2 = tpu.matmul %0, %1, %cst {dimension_numbers = #tpu.dot_dimension_numbers<[1], [0], [0], [1], [0, 0, 1, 1], [], []>} : vector<16x96xbf16>, vector<96x32xbf16>, vector<16x32xf32> -> vector<16x32xf32>
    %c0_3 = arith.constant 0 : index
    %c0_4 = arith.constant 0 : index
    %3 = vector.load %arg3[%c0_3, %c0_4] : memref<1x32xf32, #tpu.memory_space<vmem>>, vector<1x32xf32>
    %4 = vector.broadcast %3 : vector<1x32xf32> to vector<16x32xf32>
    %5 = arith.addf %2, %4 : vector<16x32xf32>
    %cst_5 = arith.constant 5.000000e-01 : f32
    %6 = vector.broadcast %cst_5 : f32 to vector<16x32xf32>
    %7 = arith.mulf %6, %5 : vector<16x32xf32>
    %cst_6 = arith.constant 4.471500e-02 : f32
    %8 = vector.broadcast %cst_6 : f32 to vector<16x32xf32>
    %9 = arith.mulf %8, %5 : vector<16x32xf32>
    %10 = arith.mulf %9, %5 : vector<16x32xf32>
    %11 = arith.mulf %10, %5 : vector<16x32xf32>
    %12 = arith.addf %5, %11 : vector<16x32xf32>
    %cst_7 = arith.constant 0.797884583 : f32
    %13 = vector.broadcast %cst_7 : f32 to vector<16x32xf32>
    %14 = arith.mulf %13, %12 : vector<16x32xf32>
    %15 = math.tanh %14 : vector<16x32xf32>
    %cst_8 = arith.constant 1.000000e+00 : f32
    %16 = vector.broadcast %cst_8 : f32 to vector<16x32xf32>
    %17 = arith.addf %16, %15 : vector<16x32xf32>
    %18 = arith.mulf %7, %17 : vector<16x32xf32>
    %19 = arith.truncf %18 : vector<16x32xf32> to vector<16x32xbf16>
    %c0_9 = arith.constant 0 : index
    %c0_10 = arith.constant 0 : index
    %20 = vector.load %arg4[%c0_9, %c0_10] : memref<16x32xbf16, #tpu.memory_space<vmem>>, vector<16x32xbf16>
    tpu.vector_store %arg4[%c0_9, %c0_10], %19 {strides = array<i32>} : memref<16x32xbf16, #tpu.memory_space<vmem>>, vector<16x32xbf16>,
    return
  }
  func.func @transform_0(%arg0: i32) -> (i32, i32) {
    %c0_i32 = arith.constant 0 : i32
    %c0_i32_0 = arith.constant 0 : i32
    return %arg0, %c0_i32 : i32, i32
  }
  func.func @transform_1(%arg0: i32) -> (i32, i32) {
    %c0_i32 = arith.constant 0 : i32
    %c0_i32_0 = arith.constant 0 : i32
    %c0_i32_1 = arith.constant 0 : i32
    return %c0_i32, %c0_i32_0 : i32, i32
  }
  func.func @transform_2(%arg0: i32) -> (i32, i32) {
    %c0_i32 = arith.constant 0 : i32
    %c0_i32_0 = arith.constant 0 : i32
    %c0_i32_1 = arith.constant 0 : i32
    return %c0_i32, %c0_i32_0 : i32, i32
  }
  func.func @transform_3(%arg0: i32) -> (i32, i32) {
    %c0_i32 = arith.constant 0 : i32
    %c0_i32_0 = arith.constant 0 : i32
    return %arg0, %c0_i32 : i32, i32
  }
}

module attributes {stable_mosaic.version = 11 : i64} {
  func.func @_encoder_stack_kernel(%arg0: i32, %arg1: i32, %arg2: memref<1x8x32xbf16, #tpu.memory_space<vmem>>, %arg3: memref<8x32xf32, #tpu.memory_space<vmem>>, %arg4: memref<1x1x32xf32, #tpu.memory_space<vmem>>, %arg5: memref<1x1x32xf32, #tpu.memory_space<vmem>>, %arg6: memref<1x32x96xbf16, #tpu.memory_space<vmem>>, %arg7: memref<1x1x96xf32, #tpu.memory_space<vmem>>, %arg8: memref<1x32x32xbf16, #tpu.memory_space<vmem>>, %arg9: memref<1x1x32xf32, #tpu.memory_space<vmem>>, %arg10: memref<1x1x32xf32, #tpu.memory_space<vmem>>, %arg11: memref<1x1x32xf32, #tpu.memory_space<vmem>>, %arg12: memref<1x32x64xbf16, #tpu.memory_space<vmem>>, %arg13: memref<1x1x64xf32, #tpu.memory_space<vmem>>, %arg14: memref<1x64x32xbf16, #tpu.memory_space<vmem>>, %arg15: memref<1x1x32xf32, #tpu.memory_space<vmem>>, %arg16: memref<1x32xf32, #tpu.memory_space<vmem>>, %arg17: memref<1x32xf32, #tpu.memory_space<vmem>>, %arg18: memref<32x128xf32, #tpu.memory_space<vmem>>, %arg19: memref<1x128xf32, #tpu.memory_space<vmem>>, %arg20: memref<1x1x128xf32, #tpu.memory_space<vmem>>, %arg21: memref<8x32xf32, #tpu.memory_space<vmem>>) attributes {dimension_semantics = [#tpu.dimension_semantics<parallel>, #tpu.dimension_semantics<arbitrary>], iteration_bounds = array<i64: 2, 2>, scalar_prefetch = 0 : i64, scratch_operands = 1 : i64, tpu.core_type = #tpu.core_type<tc>, window_params = [{transform_indices = @transform_0, window_bounds = array<i64: 1, 8, 32>}, {pipeline_mode = #tpu.pipeline_mode<synchronous>, transform_indices = @transform_1, window_bounds = array<i64: 8, 32>}, {transform_indices = @transform_2, window_bounds = array<i64: 1, 1, 32>}, {transform_indices = @transform_3, window_bounds = array<i64: 1, 1, 32>}, {transform_indices = @transform_4, window_bounds = array<i64: 1, 32, 96>}, {transform_indices = @transform_5, window_bounds = array<i64: 1, 1, 96>}, {transform_indices = @transform_6, window_bounds = array<i64: 1, 32, 32>}, {transform_indices = @transform_7, window_bounds = array<i64: 1, 1, 32>}, {transform_indices = @transform_8, window_bounds = array<i64: 1, 1, 32>}, {transform_indices = @transform_9, window_bounds = array<i64: 1, 1, 32>}, {transform_indices = @transform_10, window_bounds = array<i64: 1, 32, 64>}, {transform_indices = @transform_11, window_bounds = array<i64: 1, 1, 64>}, {transform_indices = @transform_12, window_bounds = array<i64: 1, 64, 32>}, {transform_indices = @transform_13, window_bounds = array<i64: 1, 1, 32>}, {pipeline_mode = #tpu.pipeline_mode<synchronous>, transform_indices = @transform_14, window_bounds = array<i64: 1, 32>}, {pipeline_mode = #tpu.pipeline_mode<synchronous>, transform_indices = @transform_15, window_bounds = array<i64: 1, 32>}, {pipeline_mode = #tpu.pipeline_mode<synchronous>, transform_indices = @transform_16, window_bounds = array<i64: 32, 128>}, {pipeline_mode = #tpu.pipeline_mode<synchronous>, transform_indices = @transform_17, window_bounds = array<i64: 1, 128>}, {transform_indices = @transform_18, window_bounds = array<i64: 1, 1, 128>}]} {
    %c0_i32 = arith.constant 0 : i32
    %0 = arith.cmpi eq, %arg1, %c0_i32 : i32
    %1 = arith.extui %0 : i1 to i32
    %c0_i32_0 = arith.constant 0 : i32
    %2 = arith.cmpi ne, %1, %c0_i32_0 : i32
    scf.if %2 {
      %c0_62 = arith.constant 0 : index
      %c0_63 = arith.constant 0 : index
      %c0_64 = arith.constant 0 : index
      %162 = vector.load %arg2[%c0_62, %c0_63, %c0_64] : memref<1x8x32xbf16, #tpu.memory_space<vmem>>, vector<1x8x32xbf16>
      %163 = vector.shape_cast %162 : vector<1x8x32xbf16> to vector<8x32xbf16>
      %164 = arith.extf %163 : vector<8x32xbf16> to vector<8x32xf32>
      %c0_65 = arith.constant 0 : index
      %c0_66 = arith.constant 0 : index
      %165 = vector.load %arg3[%c0_65, %c0_66] : memref<8x32xf32, #tpu.memory_space<vmem>>, vector<8x32xf32>
      %166 = arith.addf %164, %165 : vector<8x32xf32>
      %c0_67 = arith.constant 0 : index
      %c0_68 = arith.constant 0 : index
      %167 = vector.load %arg21[%c0_67, %c0_68] : memref<8x32xf32, #tpu.memory_space<vmem>>, vector<8x32xf32>
      tpu.vector_store %arg21[%c0_67, %c0_68], %166 {strides = array<i32>} : memref<8x32xf32, #tpu.memory_space<vmem>>, vector<8x32xf32>,
    } else {
    }
    %c0 = arith.constant 0 : index
    %c0_1 = arith.constant 0 : index
    %3 = vector.load %arg21[%c0, %c0_1] : memref<8x32xf32, #tpu.memory_space<vmem>>, vector<8x32xf32>
    %c0_2 = arith.constant 0 : index
    %c0_3 = arith.constant 0 : index
    %c0_4 = arith.constant 0 : index
    %4 = vector.load %arg4[%c0_2, %c0_3, %c0_4] : memref<1x1x32xf32, #tpu.memory_space<vmem>>, vector<1x1x32xf32>
    %5 = vector.shape_cast %4 : vector<1x1x32xf32> to vector<1x32xf32>
    %c0_5 = arith.constant 0 : index
    %c0_6 = arith.constant 0 : index
    %c0_7 = arith.constant 0 : index
    %6 = vector.load %arg5[%c0_5, %c0_6, %c0_7] : memref<1x1x32xf32, #tpu.memory_space<vmem>>, vector<1x1x32xf32>
    %7 = vector.shape_cast %6 : vector<1x1x32xf32> to vector<1x32xf32>
    %cst = arith.constant dense<0.000000e+00> : vector<8xf32>
    %8 = vector.multi_reduction <add>, %3, %cst [1] : vector<8x32xf32> to vector<8xf32>
    %9 = vector.shape_cast %8 : vector<8xf32> to vector<8x1xf32>
    %cst_8 = arith.constant 3.200000e+01 : f32
    %10 = vector.broadcast %cst_8 : f32 to vector<8x1xf32>
    %11 = arith.divf %9, %10 : vector<8x1xf32>
    %12 = vector.broadcast %11 : vector<8x1xf32> to vector<8x32xf32>
    %13 = arith.subf %3, %12 : vector<8x32xf32>
    %14 = arith.mulf %13, %13 : vector<8x32xf32>
    %cst_9 = arith.constant dense<0.000000e+00> : vector<8xf32>
    %15 = vector.multi_reduction <add>, %14, %cst_9 [1] : vector<8x32xf32> to vector<8xf32>
    %16 = vector.shape_cast %15 : vector<8xf32> to vector<8x1xf32>
    %cst_10 = arith.constant 3.200000e+01 : f32
    %17 = vector.broadcast %cst_10 : f32 to vector<8x1xf32>
    %18 = arith.divf %16, %17 : vector<8x1xf32>
    %19 = vector.broadcast %11 : vector<8x1xf32> to vector<8x32xf32>
    %20 = arith.subf %3, %19 : vector<8x32xf32>
    %cst_11 = arith.constant 9.99999974E-6 : f32
    %21 = vector.broadcast %cst_11 : f32 to vector<8x1xf32>
    %22 = arith.addf %18, %21 : vector<8x1xf32>
    %23 = math.rsqrt %22 : vector<8x1xf32>
    %24 = vector.broadcast %23 : vector<8x1xf32> to vector<8x32xf32>
    %25 = arith.mulf %20, %24 : vector<8x32xf32>
    %26 = vector.broadcast %5 : vector<1x32xf32> to vector<8x32xf32>
    %27 = arith.mulf %25, %26 : vector<8x32xf32>
    %28 = vector.broadcast %7 : vector<1x32xf32> to vector<8x32xf32>
    %29 = arith.addf %27, %28 : vector<8x32xf32>
    %30 = arith.truncf %29 : vector<8x32xf32> to vector<8x32xbf16>
    %c0_12 = arith.constant 0 : index
    %c0_13 = arith.constant 0 : index
    %c0_14 = arith.constant 0 : index
    %31 = vector.load %arg6[%c0_12, %c0_13, %c0_14] : memref<1x32x96xbf16, #tpu.memory_space<vmem>>, vector<1x32x96xbf16>
    %32 = vector.shape_cast %31 : vector<1x32x96xbf16> to vector<32x96xbf16>
    %cst_15 = arith.constant dense<0.000000e+00> : vector<8x96xf32>
    %33 = tpu.matmul %30, %32, %cst_15 {dimension_numbers = #tpu.dot_dimension_numbers<[1], [0], [0], [1], [0, 0, 1, 1], [], []>} : vector<8x32xbf16>, vector<32x96xbf16>, vector<8x96xf32> -> vector<8x96xf32>
    %c0_16 = arith.constant 0 : index
    %c0_17 = arith.constant 0 : index
    %c0_18 = arith.constant 0 : index
    %34 = vector.load %arg7[%c0_16, %c0_17, %c0_18] : memref<1x1x96xf32, #tpu.memory_space<vmem>>, vector<1x1x96xf32>
    %35 = vector.shape_cast %34 : vector<1x1x96xf32> to vector<1x96xf32>
    %36 = vector.broadcast %35 : vector<1x96xf32> to vector<8x96xf32>
    %37 = arith.addf %33, %36 : vector<8x96xf32>
    %38 = vector.extract_strided_slice %37 {offsets = [0, 0], sizes = [8, 32], strides = [1, 1]} : vector<8x96xf32> to vector<8x32xf32>
    %39 = arith.truncf %38 : vector<8x32xf32> to vector<8x32xbf16>
    %40 = vector.extract_strided_slice %39 {offsets = [0, 0], sizes = [8, 8], strides = [1, 1]} : vector<8x32xbf16> to vector<8x8xbf16>
    %41 = vector.extract_strided_slice %39 {offsets = [0, 8], sizes = [8, 8], strides = [1, 1]} : vector<8x32xbf16> to vector<8x8xbf16>
    %42 = vector.extract_strided_slice %39 {offsets = [0, 16], sizes = [8, 8], strides = [1, 1]} : vector<8x32xbf16> to vector<8x8xbf16>
    %43 = vector.extract_strided_slice %39 {offsets = [0, 24], sizes = [8, 8], strides = [1, 1]} : vector<8x32xbf16> to vector<8x8xbf16>
    %44 = vector.shape_cast %40 : vector<8x8xbf16> to vector<1x8x8xbf16>
    %45 = vector.shape_cast %41 : vector<8x8xbf16> to vector<1x8x8xbf16>
    %46 = vector.shape_cast %42 : vector<8x8xbf16> to vector<1x8x8xbf16>
    %47 = vector.shape_cast %43 : vector<8x8xbf16> to vector<1x8x8xbf16>
    %48 = tpu.concatenate %44, %45, %46, %47 in 0 : vector<1x8x8xbf16>, vector<1x8x8xbf16>, vector<1x8x8xbf16>, vector<1x8x8xbf16> -> vector<4x8x8xbf16>
    %49 = vector.extract_strided_slice %37 {offsets = [0, 32], sizes = [8, 32], strides = [1, 1]} : vector<8x96xf32> to vector<8x32xf32>
    %50 = arith.truncf %49 : vector<8x32xf32> to vector<8x32xbf16>
    %51 = vector.extract_strided_slice %50 {offsets = [0, 0], sizes = [8, 8], strides = [1, 1]} : vector<8x32xbf16> to vector<8x8xbf16>
    %52 = vector.extract_strided_slice %50 {offsets = [0, 8], sizes = [8, 8], strides = [1, 1]} : vector<8x32xbf16> to vector<8x8xbf16>
    %53 = vector.extract_strided_slice %50 {offsets = [0, 16], sizes = [8, 8], strides = [1, 1]} : vector<8x32xbf16> to vector<8x8xbf16>
    %54 = vector.extract_strided_slice %50 {offsets = [0, 24], sizes = [8, 8], strides = [1, 1]} : vector<8x32xbf16> to vector<8x8xbf16>
    %55 = vector.shape_cast %51 : vector<8x8xbf16> to vector<1x8x8xbf16>
    %56 = vector.shape_cast %52 : vector<8x8xbf16> to vector<1x8x8xbf16>
    %57 = vector.shape_cast %53 : vector<8x8xbf16> to vector<1x8x8xbf16>
    %58 = vector.shape_cast %54 : vector<8x8xbf16> to vector<1x8x8xbf16>
    %59 = tpu.concatenate %55, %56, %57, %58 in 0 : vector<1x8x8xbf16>, vector<1x8x8xbf16>, vector<1x8x8xbf16>, vector<1x8x8xbf16> -> vector<4x8x8xbf16>
    %60 = vector.extract_strided_slice %37 {offsets = [0, 64], sizes = [8, 32], strides = [1, 1]} : vector<8x96xf32> to vector<8x32xf32>
    %61 = arith.truncf %60 : vector<8x32xf32> to vector<8x32xbf16>
    %62 = vector.extract_strided_slice %61 {offsets = [0, 0], sizes = [8, 8], strides = [1, 1]} : vector<8x32xbf16> to vector<8x8xbf16>
    %63 = vector.extract_strided_slice %61 {offsets = [0, 8], sizes = [8, 8], strides = [1, 1]} : vector<8x32xbf16> to vector<8x8xbf16>
    %64 = vector.extract_strided_slice %61 {offsets = [0, 16], sizes = [8, 8], strides = [1, 1]} : vector<8x32xbf16> to vector<8x8xbf16>
    %65 = vector.extract_strided_slice %61 {offsets = [0, 24], sizes = [8, 8], strides = [1, 1]} : vector<8x32xbf16> to vector<8x8xbf16>
    %66 = vector.shape_cast %62 : vector<8x8xbf16> to vector<1x8x8xbf16>
    %67 = vector.shape_cast %63 : vector<8x8xbf16> to vector<1x8x8xbf16>
    %68 = vector.shape_cast %64 : vector<8x8xbf16> to vector<1x8x8xbf16>
    %69 = vector.shape_cast %65 : vector<8x8xbf16> to vector<1x8x8xbf16>
    %70 = tpu.concatenate %66, %67, %68, %69 in 0 : vector<1x8x8xbf16>, vector<1x8x8xbf16>, vector<1x8x8xbf16>, vector<1x8x8xbf16> -> vector<4x8x8xbf16>
    "tpu.trace_start"() <{level = 10 : i32, message = "hqe,hke->hqk"}> : () -> ()
    %cst_19 = arith.constant dense<0.000000e+00> : vector<4x8x8xf32>
    %71 = tpu.matmul %48, %59, %cst_19 {dimension_numbers = #tpu.dot_dimension_numbers<[2], [2], [1], [1], [0, 0, 0, 1, 1, 1], [0], [0]>} : vector<4x8x8xbf16>, vector<4x8x8xbf16>, vector<4x8x8xf32> -> vector<4x8x8xf32>
    "tpu.trace_stop"() : () -> ()
    %cst_20 = arith.constant dense<0xFF800000> : vector<4x8xf32>
    %72 = vector.multi_reduction <maximumf>, %71, %cst_20 [2] : vector<4x8x8xf32> to vector<4x8xf32>
    %73 = vector.shape_cast %72 : vector<4x8xf32> to vector<4x8x1xf32>
    %74 = vector.broadcast %73 : vector<4x8x1xf32> to vector<4x8x8xf32>
    %75 = arith.subf %71, %74 : vector<4x8x8xf32>
    %76 = math.exp %75 : vector<4x8x8xf32>
    %cst_21 = arith.constant dense<0.000000e+00> : vector<4x8xf32>
    %77 = vector.multi_reduction <add>, %76, %cst_21 [2] : vector<4x8x8xf32> to vector<4x8xf32>
    %78 = vector.shape_cast %77 : vector<4x8xf32> to vector<4x8x1xf32>
    %79 = tpu.reciprocal %78 {approx = true} : vector<4x8x1xf32> -> vector<4x8x1xf32>
    %80 = vector.broadcast %79 : vector<4x8x1xf32> to vector<4x8x8xf32>
    %81 = arith.mulf %76, %80 : vector<4x8x8xf32>
    %82 = arith.truncf %81 : vector<4x8x8xf32> to vector<4x8x8xbf16>
    "tpu.trace_start"() <{level = 10 : i32, message = "hqk,hke->hqe"}> : () -> ()
    %cst_22 = arith.constant dense<0.000000e+00> : vector<4x8x8xf32>
    %83 = tpu.matmul %82, %70, %cst_22 {dimension_numbers = #tpu.dot_dimension_numbers<[2], [1], [1], [2], [0, 0, 0, 1, 1, 2], [0], [0]>} : vector<4x8x8xbf16>, vector<4x8x8xbf16>, vector<4x8x8xf32> -> vector<4x8x8xf32>
    "tpu.trace_stop"() : () -> ()
    %84 = vector.extract_strided_slice %83 {offsets = [0, 0, 0], sizes = [1, 8, 8], strides = [1, 1, 1]} : vector<4x8x8xf32> to vector<1x8x8xf32>
    %85 = vector.shape_cast %84 : vector<1x8x8xf32> to vector<8x8xf32>
    %86 = vector.extract_strided_slice %83 {offsets = [1, 0, 0], sizes = [1, 8, 8], strides = [1, 1, 1]} : vector<4x8x8xf32> to vector<1x8x8xf32>
    %87 = vector.shape_cast %86 : vector<1x8x8xf32> to vector<8x8xf32>
    %88 = vector.extract_strided_slice %83 {offsets = [2, 0, 0], sizes = [1, 8, 8], strides = [1, 1, 1]} : vector<4x8x8xf32> to vector<1x8x8xf32>
    %89 = vector.shape_cast %88 : vector<1x8x8xf32> to vector<8x8xf32>
    %90 = vector.extract_strided_slice %83 {offsets = [3, 0, 0], sizes = [1, 8, 8], strides = [1, 1, 1]} : vector<4x8x8xf32> to vector<1x8x8xf32>
    %91 = vector.shape_cast %90 : vector<1x8x8xf32> to vector<8x8xf32>
    %92 = tpu.concatenate %85, %87, %89, %91 in 1 : vector<8x8xf32>, vector<8x8xf32>, vector<8x8xf32>, vector<8x8xf32> -> vector<8x32xf32>
    %93 = arith.truncf %92 : vector<8x32xf32> to vector<8x32xbf16>
    %c0_23 = arith.constant 0 : index
    %c0_24 = arith.constant 0 : index
    %c0_25 = arith.constant 0 : index
    %94 = vector.load %arg8[%c0_23, %c0_24, %c0_25] : memref<1x32x32xbf16, #tpu.memory_space<vmem>>, vector<1x32x32xbf16>
    %95 = vector.shape_cast %94 : vector<1x32x32xbf16> to vector<32x32xbf16>
    %cst_26 = arith.constant dense<0.000000e+00> : vector<8x32xf32>
    %96 = tpu.matmul %93, %95, %cst_26 {dimension_numbers = #tpu.dot_dimension_numbers<[1], [0], [0], [1], [0, 0, 1, 1], [], []>} : vector<8x32xbf16>, vector<32x32xbf16>, vector<8x32xf32> -> vector<8x32xf32>
    %97 = arith.addf %3, %96 : vector<8x32xf32>
    %c0_27 = arith.constant 0 : index
    %c0_28 = arith.constant 0 : index
    %c0_29 = arith.constant 0 : index
    %98 = vector.load %arg9[%c0_27, %c0_28, %c0_29] : memref<1x1x32xf32, #tpu.memory_space<vmem>>, vector<1x1x32xf32>
    %99 = vector.shape_cast %98 : vector<1x1x32xf32> to vector<1x32xf32>
    %100 = vector.broadcast %99 : vector<1x32xf32> to vector<8x32xf32>
    %101 = arith.addf %97, %100 : vector<8x32xf32>
    %c0_30 = arith.constant 0 : index
    %c0_31 = arith.constant 0 : index
    %c0_32 = arith.constant 0 : index
    %102 = vector.load %arg10[%c0_30, %c0_31, %c0_32] : memref<1x1x32xf32, #tpu.memory_space<vmem>>, vector<1x1x32xf32>
    %103 = vector.shape_cast %102 : vector<1x1x32xf32> to vector<1x32xf32>
    %c0_33 = arith.constant 0 : index
    %c0_34 = arith.constant 0 : index
    %c0_35 = arith.constant 0 : index
    %104 = vector.load %arg11[%c0_33, %c0_34, %c0_35] : memref<1x1x32xf32, #tpu.memory_space<vmem>>, vector<1x1x32xf32>
    %105 = vector.shape_cast %104 : vector<1x1x32xf32> to vector<1x32xf32>
    %cst_36 = arith.constant dense<0.000000e+00> : vector<8xf32>
    %106 = vector.multi_reduction <add>, %101, %cst_36 [1] : vector<8x32xf32> to vector<8xf32>
    %107 = vector.shape_cast %106 : vector<8xf32> to vector<8x1xf32>
    %cst_37 = arith.constant 3.200000e+01 : f32
    %108 = vector.broadcast %cst_37 : f32 to vector<8x1xf32>
    %109 = arith.divf %107, %108 : vector<8x1xf32>
    %110 = vector.broadcast %109 : vector<8x1xf32> to vector<8x32xf32>
    %111 = arith.subf %101, %110 : vector<8x32xf32>
    %112 = arith.mulf %111, %111 : vector<8x32xf32>
    %cst_38 = arith.constant dense<0.000000e+00> : vector<8xf32>
    %113 = vector.multi_reduction <add>, %112, %cst_38 [1] : vector<8x32xf32> to vector<8xf32>
    %114 = vector.shape_cast %113 : vector<8xf32> to vector<8x1xf32>
    %cst_39 = arith.constant 3.200000e+01 : f32
    %115 = vector.broadcast %cst_39 : f32 to vector<8x1xf32>
    %116 = arith.divf %114, %115 : vector<8x1xf32>
    %117 = vector.broadcast %109 : vector<8x1xf32> to vector<8x32xf32>
    %118 = arith.subf %101, %117 : vector<8x32xf32>
    %cst_40 = arith.constant 9.99999974E-6 : f32
    %119 = vector.broadcast %cst_40 : f32 to vector<8x1xf32>
    %120 = arith.addf %116, %119 : vector<8x1xf32>
    %121 = math.rsqrt %120 : vector<8x1xf32>
    %122 = vector.broadcast %121 : vector<8x1xf32> to vector<8x32xf32>
    %123 = arith.mulf %118, %122 : vector<8x32xf32>
    %124 = vector.broadcast %103 : vector<1x32xf32> to vector<8x32xf32>
    %125 = arith.mulf %123, %124 : vector<8x32xf32>
    %126 = vector.broadcast %105 : vector<1x32xf32> to vector<8x32xf32>
    %127 = arith.addf %125, %126 : vector<8x32xf32>
    %128 = arith.truncf %127 : vector<8x32xf32> to vector<8x32xbf16>
    %c0_41 = arith.constant 0 : index
    %c0_42 = arith.constant 0 : index
    %c0_43 = arith.constant 0 : index
    %129 = vector.load %arg12[%c0_41, %c0_42, %c0_43] : memref<1x32x64xbf16, #tpu.memory_space<vmem>>, vector<1x32x64xbf16>
    %130 = vector.shape_cast %129 : vector<1x32x64xbf16> to vector<32x64xbf16>
    %cst_44 = arith.constant dense<0.000000e+00> : vector<8x64xf32>
    %131 = tpu.matmul %128, %130, %cst_44 {dimension_numbers = #tpu.dot_dimension_numbers<[1], [0], [0], [1], [0, 0, 1, 1], [], []>} : vector<8x32xbf16>, vector<32x64xbf16>, vector<8x64xf32> -> vector<8x64xf32>
    %c0_45 = arith.constant 0 : index
    %c0_46 = arith.constant 0 : index
    %c0_47 = arith.constant 0 : index
    %132 = vector.load %arg13[%c0_45, %c0_46, %c0_47] : memref<1x1x64xf32, #tpu.memory_space<vmem>>, vector<1x1x64xf32>
    %133 = vector.shape_cast %132 : vector<1x1x64xf32> to vector<1x64xf32>
    %134 = vector.broadcast %133 : vector<1x64xf32> to vector<8x64xf32>
    %135 = arith.addf %131, %134 : vector<8x64xf32>
    %cst_48 = arith.constant 5.000000e-01 : f32
    %136 = vector.broadcast %cst_48 : f32 to vector<8x64xf32>
    %137 = arith.mulf %136, %135 : vector<8x64xf32>
    %cst_49 = arith.constant 4.471500e-02 : f32
    %138 = vector.broadcast %cst_49 : f32 to vector<8x64xf32>
    %139 = arith.mulf %138, %135 : vector<8x64xf32>
    %140 = arith.mulf %139, %135 : vector<8x64xf32>
    %141 = arith.mulf %140, %135 : vector<8x64xf32>
    %142 = arith.addf %135, %141 : vector<8x64xf32>
    %cst_50 = arith.constant 0.797884583 : f32
    %143 = vector.broadcast %cst_50 : f32 to vector<8x64xf32>
    %144 = arith.mulf %143, %142 : vector<8x64xf32>
    %145 = math.tanh %144 : vector<8x64xf32>
    %cst_51 = arith.constant 1.000000e+00 : f32
    %146 = vector.broadcast %cst_51 : f32 to vector<8x64xf32>
    %147 = arith.addf %146, %145 : vector<8x64xf32>
    %148 = arith.mulf %137, %147 : vector<8x64xf32>
    %149 = arith.truncf %148 : vector<8x64xf32> to vector<8x64xbf16>
    %c0_52 = arith.constant 0 : index
    %c0_53 = arith.constant 0 : index
    %c0_54 = arith.constant 0 : index
    %150 = vector.load %arg14[%c0_52, %c0_53, %c0_54] : memref<1x64x32xbf16, #tpu.memory_space<vmem>>, vector<1x64x32xbf16>
    %151 = vector.shape_cast %150 : vector<1x64x32xbf16> to vector<64x32xbf16>
    %cst_55 = arith.constant dense<0.000000e+00> : vector<8x32xf32>
    %152 = tpu.matmul %149, %151, %cst_55 {dimension_numbers = #tpu.dot_dimension_numbers<[1], [0], [0], [1], [0, 0, 1, 1], [], []>} : vector<8x64xbf16>, vector<64x32xbf16>, vector<8x32xf32> -> vector<8x32xf32>
    %153 = arith.addf %101, %152 : vector<8x32xf32>
    %c0_56 = arith.constant 0 : index
    %c0_57 = arith.constant 0 : index
    %c0_58 = arith.constant 0 : index
    %154 = vector.load %arg15[%c0_56, %c0_57, %c0_58] : memref<1x1x32xf32, #tpu.memory_space<vmem>>, vector<1x1x32xf32>
    %155 = vector.shape_cast %154 : vector<1x1x32xf32> to vector<1x32xf32>
    %156 = vector.broadcast %155 : vector<1x32xf32> to vector<8x32xf32>
    %157 = arith.addf %153, %156 : vector<8x32xf32>
    %c0_59 = arith.constant 0 : index
    %c0_60 = arith.constant 0 : index
    %158 = vector.load %arg21[%c0_59, %c0_60] : memref<8x32xf32, #tpu.memory_space<vmem>>, vector<8x32xf32>
    tpu.vector_store %arg21[%c0_59, %c0_60], %157 {strides = array<i32>} : memref<8x32xf32, #tpu.memory_space<vmem>>, vector<8x32xf32>,
    %c1_i32 = arith.constant 1 : i32
    %159 = arith.cmpi eq, %arg1, %c1_i32 : i32
    %160 = arith.extui %159 : i1 to i32
    %c0_i32_61 = arith.constant 0 : i32
    %161 = arith.cmpi ne, %160, %c0_i32_61 : i32
    scf.if %161 {
      %c0_62 = arith.constant 0 : index
      %c0_63 = arith.constant 0 : index
      %162 = vector.load %arg16[%c0_62, %c0_63] : memref<1x32xf32, #tpu.memory_space<vmem>>, vector<1x32xf32>
      %c0_64 = arith.constant 0 : index
      %c0_65 = arith.constant 0 : index
      %163 = vector.load %arg17[%c0_64, %c0_65] : memref<1x32xf32, #tpu.memory_space<vmem>>, vector<1x32xf32>
      %cst_66 = arith.constant dense<0.000000e+00> : vector<8xf32>
      %164 = vector.multi_reduction <add>, %157, %cst_66 [1] : vector<8x32xf32> to vector<8xf32>
      %165 = vector.shape_cast %164 : vector<8xf32> to vector<8x1xf32>
      %cst_67 = arith.constant 3.200000e+01 : f32
      %166 = vector.broadcast %cst_67 : f32 to vector<8x1xf32>
      %167 = arith.divf %165, %166 : vector<8x1xf32>
      %168 = vector.broadcast %167 : vector<8x1xf32> to vector<8x32xf32>
      %169 = arith.subf %157, %168 : vector<8x32xf32>
      %170 = arith.mulf %169, %169 : vector<8x32xf32>
      %cst_68 = arith.constant dense<0.000000e+00> : vector<8xf32>
      %171 = vector.multi_reduction <add>, %170, %cst_68 [1] : vector<8x32xf32> to vector<8xf32>
      %172 = vector.shape_cast %171 : vector<8xf32> to vector<8x1xf32>
      %cst_69 = arith.constant 3.200000e+01 : f32
      %173 = vector.broadcast %cst_69 : f32 to vector<8x1xf32>
      %174 = arith.divf %172, %173 : vector<8x1xf32>
      %175 = vector.broadcast %167 : vector<8x1xf32> to vector<8x32xf32>
      %176 = arith.subf %157, %175 : vector<8x32xf32>
      %cst_70 = arith.constant 9.99999974E-6 : f32
      %177 = vector.broadcast %cst_70 : f32 to vector<8x1xf32>
      %178 = arith.addf %174, %177 : vector<8x1xf32>
      %179 = math.rsqrt %178 : vector<8x1xf32>
      %180 = vector.broadcast %179 : vector<8x1xf32> to vector<8x32xf32>
      %181 = arith.mulf %176, %180 : vector<8x32xf32>
      %182 = vector.broadcast %162 : vector<1x32xf32> to vector<8x32xf32>
      %183 = arith.mulf %181, %182 : vector<8x32xf32>
      %184 = vector.broadcast %163 : vector<1x32xf32> to vector<8x32xf32>
      %185 = arith.addf %183, %184 : vector<8x32xf32>
      %cst_71 = arith.constant dense<0.000000e+00> : vector<32xf32>
      %186 = vector.multi_reduction <add>, %185, %cst_71 [0] : vector<8x32xf32> to vector<32xf32>
      %187 = vector.shape_cast %186 : vector<32xf32> to vector<1x32xf32>
      %cst_72 = arith.constant 8.000000e+00 : f32
      %188 = vector.broadcast %cst_72 : f32 to vector<1x32xf32>
      %189 = arith.divf %187, %188 : vector<1x32xf32>
      %c0_73 = arith.constant 0 : index
      %c0_74 = arith.constant 0 : index
      %190 = vector.load %arg18[%c0_73, %c0_74] : memref<32x128xf32, #tpu.memory_space<vmem>>, vector<32x128xf32>
      %cst_75 = arith.constant dense<0.000000e+00> : vector<1x128xf32>
      %191 = tpu.matmul %189, %190, %cst_75 {dimension_numbers = #tpu.dot_dimension_numbers<[1], [0], [0], [1], [0, 0, 1, 1], [], []>} : vector<1x32xf32>, vector<32x128xf32>, vector<1x128xf32> -> vector<1x128xf32>
      %c0_76 = arith.constant 0 : index
      %c0_77 = arith.constant 0 : index
      %192 = vector.load %arg19[%c0_76, %c0_77] : memref<1x128xf32, #tpu.memory_space<vmem>>, vector<1x128xf32>
      %193 = arith.addf %191, %192 : vector<1x128xf32>
      %194 = arith.negf %193 : vector<1x128xf32>
      %195 = math.exp %194 : vector<1x128xf32>
      %cst_78 = arith.constant 1.000000e+00 : f32
      %196 = vector.broadcast %cst_78 : f32 to vector<1x128xf32>
      %197 = arith.addf %196, %195 : vector<1x128xf32>
      %198 = arith.divf %196, %197 : vector<1x128xf32>
      %c0_79 = arith.constant 0 : index
      %c0_80 = arith.constant 0 : index
      %c0_81 = arith.constant 0 : index
      %199 = vector.load %arg20[%c0_79, %c0_80, %c0_81] : memref<1x1x128xf32, #tpu.memory_space<vmem>>, vector<1x1x128xf32>
      %200 = vector.shape_cast %199 : vector<1x1x128xf32> to vector<1x128xf32>
      %201 = vector.shape_cast %198 : vector<1x128xf32> to vector<1x1x128xf32>
      tpu.vector_store %arg20[%c0_79, %c0_80, %c0_81], %201 {strides = array<i32>} : memref<1x1x128xf32, #tpu.memory_space<vmem>>, vector<1x1x128xf32>,
    } else {
    }
    return
  }
  func.func @transform_0(%arg0: i32, %arg1: i32) -> (i32, i32, i32) {
    %c0_i32 = arith.constant 0 : i32
    %c0_i32_0 = arith.constant 0 : i32
    %c0_i32_1 = arith.constant 0 : i32
    return %arg0, %c0_i32, %c0_i32_0 : i32, i32, i32
  }
  func.func @transform_1(%arg0: i32, %arg1: i32) -> (i32, i32) {
    %c0_i32 = arith.constant 0 : i32
    %c0_i32_0 = arith.constant 0 : i32
    %c0_i32_1 = arith.constant 0 : i32
    return %c0_i32, %c0_i32_0 : i32, i32
  }
  func.func @transform_2(%arg0: i32, %arg1: i32) -> (i32, i32, i32) {
    %c0_i32 = arith.constant 0 : i32
    %c0_i32_0 = arith.constant 0 : i32
    %c0_i32_1 = arith.constant 0 : i32
    return %arg1, %c0_i32, %c0_i32_0 : i32, i32, i32
  }
  func.func @transform_3(%arg0: i32, %arg1: i32) -> (i32, i32, i32) {
    %c0_i32 = arith.constant 0 : i32
    %c0_i32_0 = arith.constant 0 : i32
    %c0_i32_1 = arith.constant 0 : i32
    return %arg1, %c0_i32, %c0_i32_0 : i32, i32, i32
  }
  func.func @transform_4(%arg0: i32, %arg1: i32) -> (i32, i32, i32) {
    %c0_i32 = arith.constant 0 : i32
    %c0_i32_0 = arith.constant 0 : i32
    %c0_i32_1 = arith.constant 0 : i32
    return %arg1, %c0_i32, %c0_i32_0 : i32, i32, i32
  }
  func.func @transform_5(%arg0: i32, %arg1: i32) -> (i32, i32, i32) {
    %c0_i32 = arith.constant 0 : i32
    %c0_i32_0 = arith.constant 0 : i32
    %c0_i32_1 = arith.constant 0 : i32
    return %arg1, %c0_i32, %c0_i32_0 : i32, i32, i32
  }
  func.func @transform_6(%arg0: i32, %arg1: i32) -> (i32, i32, i32) {
    %c0_i32 = arith.constant 0 : i32
    %c0_i32_0 = arith.constant 0 : i32
    %c0_i32_1 = arith.constant 0 : i32
    return %arg1, %c0_i32, %c0_i32_0 : i32, i32, i32
  }
  func.func @transform_7(%arg0: i32, %arg1: i32) -> (i32, i32, i32) {
    %c0_i32 = arith.constant 0 : i32
    %c0_i32_0 = arith.constant 0 : i32
    %c0_i32_1 = arith.constant 0 : i32
    return %arg1, %c0_i32, %c0_i32_0 : i32, i32, i32
  }
  func.func @transform_8(%arg0: i32, %arg1: i32) -> (i32, i32, i32) {
    %c0_i32 = arith.constant 0 : i32
    %c0_i32_0 = arith.constant 0 : i32
    %c0_i32_1 = arith.constant 0 : i32
    return %arg1, %c0_i32, %c0_i32_0 : i32, i32, i32
  }
  func.func @transform_9(%arg0: i32, %arg1: i32) -> (i32, i32, i32) {
    %c0_i32 = arith.constant 0 : i32
    %c0_i32_0 = arith.constant 0 : i32
    %c0_i32_1 = arith.constant 0 : i32
    return %arg1, %c0_i32, %c0_i32_0 : i32, i32, i32
  }
  func.func @transform_10(%arg0: i32, %arg1: i32) -> (i32, i32, i32) {
    %c0_i32 = arith.constant 0 : i32
    %c0_i32_0 = arith.constant 0 : i32
    %c0_i32_1 = arith.constant 0 : i32
    return %arg1, %c0_i32, %c0_i32_0 : i32, i32, i32
  }
  func.func @transform_11(%arg0: i32, %arg1: i32) -> (i32, i32, i32) {
    %c0_i32 = arith.constant 0 : i32
    %c0_i32_0 = arith.constant 0 : i32
    %c0_i32_1 = arith.constant 0 : i32
    return %arg1, %c0_i32, %c0_i32_0 : i32, i32, i32
  }
  func.func @transform_12(%arg0: i32, %arg1: i32) -> (i32, i32, i32) {
    %c0_i32 = arith.constant 0 : i32
    %c0_i32_0 = arith.constant 0 : i32
    %c0_i32_1 = arith.constant 0 : i32
    return %arg1, %c0_i32, %c0_i32_0 : i32, i32, i32
  }
  func.func @transform_13(%arg0: i32, %arg1: i32) -> (i32, i32, i32) {
    %c0_i32 = arith.constant 0 : i32
    %c0_i32_0 = arith.constant 0 : i32
    %c0_i32_1 = arith.constant 0 : i32
    return %arg1, %c0_i32, %c0_i32_0 : i32, i32, i32
  }
  func.func @transform_14(%arg0: i32, %arg1: i32) -> (i32, i32) {
    %c0_i32 = arith.constant 0 : i32
    %c0_i32_0 = arith.constant 0 : i32
    %c0_i32_1 = arith.constant 0 : i32
    return %c0_i32, %c0_i32_0 : i32, i32
  }
  func.func @transform_15(%arg0: i32, %arg1: i32) -> (i32, i32) {
    %c0_i32 = arith.constant 0 : i32
    %c0_i32_0 = arith.constant 0 : i32
    %c0_i32_1 = arith.constant 0 : i32
    return %c0_i32, %c0_i32_0 : i32, i32
  }
  func.func @transform_16(%arg0: i32, %arg1: i32) -> (i32, i32) {
    %c0_i32 = arith.constant 0 : i32
    %c0_i32_0 = arith.constant 0 : i32
    %c0_i32_1 = arith.constant 0 : i32
    return %c0_i32, %c0_i32_0 : i32, i32
  }
  func.func @transform_17(%arg0: i32, %arg1: i32) -> (i32, i32) {
    %c0_i32 = arith.constant 0 : i32
    %c0_i32_0 = arith.constant 0 : i32
    %c0_i32_1 = arith.constant 0 : i32
    return %c0_i32, %c0_i32_0 : i32, i32
  }
  func.func @transform_18(%arg0: i32, %arg1: i32) -> (i32, i32, i32) {
    %c0_i32 = arith.constant 0 : i32
    %c0_i32_0 = arith.constant 0 : i32
    %c0_i32_1 = arith.constant 0 : i32
    return %arg0, %c0_i32, %c0_i32_0 : i32, i32, i32
  }
}

</mosaic_0001>

<bundles_post_ra>
// kernel: whisper_classifier_forward.3
= control target key start
LH: loop header
LB: loop body
LE: loop exit
PB: predicated region body
PF: predicated region fallthrough
CT: control target
= control target key end

     0   :  { %vm55_vm0 = vcmask 1043456   ;;  %vm48_vm1 = vcmask 195584   ;;  %vm160_vm2 = vcmask 257024   ;;  %s260_s1 = inlined_call_operand.vmem [shape: bf16[24,32], index: 1, kind: input, shape index: {}]   ;;  %s261_s0 = inlined_call_operand.vmem [shape: bf16[32,24], index: 0, kind: input, shape index: {}]   ;;  %s262_s2 = inlined_call_operand.vmem [shape: f32[1,32], index: 2, kind: input, shape index: {}]   ;;  %s263_s3 = inlined_call_operand.vmem [shape: bf16[32,32], index: 3, kind: output, shape index: {}]  }
   0x1   :  { %v197_v0 = vld [vmem:[%s260_s1 + $0x8] ss:$0 sps:$4 sm:$0xff]   ;;  %v198_v1 = vld [vmem:[%s260_s1] sm:$0xff]  }
   0x2   :  { %196 = vmatprep.subr.msk.bf16.mxu0 %vm55_vm0, %v197_v0  ;;  %v57_v2 = vsel %vm55_vm0, %v197_v0, 0  ;;  %v199_v3 = vld [vmem:[%s261_s0] sm:$0xff]   ;;  %v200_v4 = vld [vmem:[%s261_s0 + $0x8] sm:$0xff]  }
   0x3   :  { %189 = vmatpush3.bf16.msra.mxu0 %v57_v2  ;;  %192 = vmatprep.mubr.msk.bf16.mxu0 %vm48_vm1, %v199_v3  ;;  %v169_v5 = vld [vmem:[%s262_s2] ss:$0 sm:$0xff] }
   0x4   :  { %190 = vmatprep.subr.bf16.mxu0 %v198_v1 }
   0x7   :  { %191 = vmatpush3.bf16.msra.mxu0 %v198_v1 }
   0xa   :  { %193 = vmatmul.mubr.msk.bf16.vlgmr.msra.gmra.mxu0 %vm48_vm1, %v200_v4 }
  0xca   :  { %v194_v6 = vpop.f32.mrf.mxu0 }
  0xcb   :  { %v102_v7 = vadd.f32 %v194_v6, %v169_v5 }
  0xcc   :  { %v93_v8 = vpop.f32.mrf.mxu0 }
  0xcd   :  { %v114_v9 = vmul.f32 0.044715, %v102_v7  ;;  %v94_v10 = vadd.f32 %v169_v5, %v93_v8  ;;  %v110_v35 = vmul.f32 0.5, %v102_v7 }
  0xce   :  { %v195_v11 = vpop.f32.mrf.mxu0 }
  0xcf   :  { %v118_v12 = vmul.f32 %v114_v9, %v102_v7  ;;  %v112_v13 = vmul.f32 0.044715, %v94_v10  ;;  %v105_v14 = vadd.f32 %v195_v11, %v169_v5  ;;  %v108_v39 = vmul.f32 0.5, %v94_v10 }
  0xd0   :  { %v96_v15 = vpop.f32.mrf.mxu0 }
  0xd1   :  { %v122_v16 = vmul.f32 %v118_v12, %v102_v7  ;;  %v116_v17 = vmul.f32 %v112_v13, %v94_v10  ;;  %v115_v18 = vmul.f32 0.044715, %v105_v14  ;;  %v97_v19 = vadd.f32 %v169_v5, %v96_v15 }
  0xd2   :  { %v111_v44 = vmul.f32 0.5, %v105_v14 }
  0xd3   :  { %v126_v20 = vadd.f32 %v122_v16, %v102_v7  ;;  %v120_v21 = vmul.f32 %v116_v17, %v94_v10  ;;  %v119_v22 = vmul.f32 %v115_v18, %v105_v14  ;;  %v113_v23 = vmul.f32 0.044715, %v97_v19 }
  0xd4   :  { %v109_v49 = vmul.f32 0.5, %v97_v19 }
  0xd5   :  { %v130_v24 = vmul.f32 0.7978846, %v126_v20  ;;  %v124_v25 = vadd.f32 %v120_v21, %v94_v10  ;;  %v123_v26 = vmul.f32 %v119_v22, %v105_v14  ;;  %v117_v27 = vmul.f32 %v113_v23, %v97_v19 }
  0xd7   :  { %201 = vtanh.f32 %v130_v24  ;;  %v128_v28 = vmul.f32 0.7978846, %v124_v25  ;;  %v127_v29 = vadd.f32 %v123_v26, %v105_v14  ;;  %v121_v30 = vmul.f32 %v117_v27, %v97_v19 }
  0xd9   :  { %203 = vtanh.f32 %v128_v28  ;;  %v131_v31 = vmul.f32 0.7978846, %v127_v29  ;;  %v125_v32 = vadd.f32 %v121_v30, %v97_v19 }
  0xdb   :  { %205 = vtanh.f32 %v131_v31  ;;  %v129_v33 = vmul.f32 0.7978846, %v125_v32 }
  0xdd   :  { %207 = vtanh.f32 %v129_v33 }
  0xe4   :  { %v202_v34 = vpop.eup %201 }
  0xe5   :  { %v138_v36 = vadd.f32 1.0, %v202_v34 }
  0xe6   :  { %v204_v37 = vpop.eup %203 }
  0xe7   :  { %v142_v38 = vmul.f32 %v138_v36, %v110_v35  ;;  %v136_v40 = vadd.f32 1.0, %v204_v37 }
  0xe8   :  { %v206_v41 = vpop.eup %205 }
  0xe9   :  { %v182_v42 = vpack.c.bf16 %v142_v38, %v142_v38  ;;  %v140_v43 = vmul.f32 %v136_v40, %v108_v39  ;;  %v139_v45 = vadd.f32 1.0, %v206_v41 }
  0xea   :  { %v208_v46 = vpop.eup %207 }
  0xeb   :  { %163 = vst.msk [vmem:[%s263_s3 + $0x8] sm:$0xf] %vm160_vm2, %v182_v42  ;;  %v180_v47 = vpack.c.bf16 %v140_v43, %v140_v43  ;;  %v143_v48 = vmul.f32 %v139_v45, %v111_v44  ;;  %v137_v50 = vadd.f32 1.0, %v208_v46 }
  0xed   :  { %161 = vst.msk [vmem:[%s263_s3] sm:$0xf] %vm160_vm2, %v180_v47  ;;  %v183_v51 = vpack.c.bf16 %v143_v48, %v143_v48  ;;  %v141_v52 = vmul.f32 %v137_v50, %v109_v49 }
  0xef   :  { %164 = vst.msk [vmem:[%s263_s3 + $0xc] sm:$0xf] %vm160_vm2, %v183_v51  ;;  %v181_v53 = vpack.c.bf16 %v141_v52, %v141_v52 }
  0xf1   :  { %162 = vst.msk [vmem:[%s263_s3 + $0x4] sm:$0xf] %vm160_vm2, %v181_v53 }

// kernel: whisper_classifier_forward.4
= control target key start
LH: loop header
LB: loop body
LE: loop exit
PB: predicated region body
PF: predicated region fallthrough
CT: control target
= control target key end

     0   :  { %v204_v0 = vmov 0.0   ;;  %vm205_vm0 = vmmov 0   ;;  %vm77_vm1 = vcmask 785408   ;;  %vm148_vm2 = vcmask 257024   ;;  %s256_s1 = inlined_call_operand.vmem [shape: bf16[96,32], index: 1, kind: input, shape index: {}]   ;;  %s257_s0 = inlined_call_operand.vmem [shape: bf16[16,96], index: 0, kind: input, shape index: {}]   ;;  %s258_s2 = inlined_call_operand.vmem [shape: f32[1,32], index: 2, kind: input, shape index: {}]   ;;  %s259_s3 = inlined_call_operand.vmem [shape: bf16[16,32], index: 3, kind: output, shape index: {}]  }
   0x1   :  { %175 = vmatprep.subr.bf16.mxu0 %v204_v0  ;;  %v193_v1 = vld [vmem:[%s256_s1 + $0x28] sm:$0xff]   ;;  %187 = vmatprep.mubr.msk.bf16.mxu0 %vm205_vm0, %v204_v0  ;;  %v194_v2 = vld [vmem:[%s256_s1 + $0x20] sm:$0xff]   ;;  %v195_v3 = vld [vmem:[%s256_s1 + $0x18] sm:$0xff]  }
   0x2   :  { %176 = vmatpush3.bf16.msra.mxu0 %v193_v1  ;;  %v196_v4 = vld [vmem:[%s256_s1 + $0x10] sm:$0xff]   ;;  %v197_v5 = vld [vmem:[%s256_s1 + $0x8] sm:$0xff]   ;;  %v198_v6 = vld [vmem:[%s256_s1] sm:$0xff]  }
   0x3   :  { %177 = vmatprep.subr.bf16.mxu0 %v204_v0  ;;  %v199_v7 = vld [vmem:[%s257_s0] sm:$0xff]  }
   0x4   :  { %v155_v8 = vld [vmem:[%s258_s2] ss:$0 sm:$0xff] }
   0x6   :  { %178 = vmatpush3.bf16.msra.mxu0 %v194_v2 }
   0x7   :  { %179 = vmatprep.subr.bf16.mxu0 %v204_v0 }
   0xa   :  { %180 = vmatpush3.bf16.msra.mxu0 %v195_v3 }
   0xb   :  { %181 = vmatprep.subr.bf16.mxu0 %v204_v0 }
   0xe   :  { %182 = vmatpush3.bf16.msra.mxu0 %v196_v4 }
   0xf   :  { %183 = vmatprep.subr.bf16.mxu0 %v204_v0 }
  0x12   :  { %184 = vmatpush3.bf16.msra.mxu0 %v197_v5 }
  0x13   :  { %185 = vmatprep.subr.bf16.mxu0 %v204_v0 }
  0x16   :  { %186 = vmatpush3.bf16.msra.mxu0 %v198_v6 }
  0x19   :  { %188 = vmatmul.mubr.msk.bf16.vlgmr.msra.gmra.mxu0 %vm77_vm1, %v199_v7 }
  0xd9   :  { %v115_v9 = vpop.f32.mrf.mxu0 }
  0xda   :  { %v116_v10 = vadd.f32 %v155_v8, %v115_v9 }
  0xdb   :  { %v189_v11 = vpop.f32.mrf.mxu0 }
  0xdc   :  { %v124_v12 = vmul.f32 0.044715, %v116_v10  ;;  %v122_v26 = vmul.f32 0.5, %v116_v10 }
  0xdd   :  { %v118_v13 = vpop.f32.mrf.mxu0 }
  0xde   :  { %v126_v14 = vmul.f32 %v124_v12, %v116_v10  ;;  %v119_v15 = vadd.f32 %v155_v8, %v118_v13 }
  0xdf   :  { %v190_v16 = vpop.f32.mrf.mxu0 }
  0xe0   :  { %v128_v17 = vmul.f32 %v126_v14, %v116_v10  ;;  %v125_v18 = vmul.f32 0.044715, %v119_v15  ;;  %v123_v31 = vmul.f32 0.5, %v119_v15 }
  0xe2   :  { %v130_v19 = vadd.f32 %v128_v17, %v116_v10  ;;  %v127_v20 = vmul.f32 %v125_v18, %v119_v15 }
  0xe4   :  { %v132_v21 = vmul.f32 0.7978846, %v130_v19  ;;  %v129_v22 = vmul.f32 %v127_v20, %v119_v15 }
  0xe6   :  { %200 = vtanh.f32 %v132_v21  ;;  %v131_v23 = vadd.f32 %v129_v22, %v119_v15 }
  0xe8   :  { %v133_v24 = vmul.f32 0.7978846, %v131_v23 }
  0xea   :  { %202 = vtanh.f32 %v133_v24 }
  0xf3   :  { %v201_v25 = vpop.eup %200 }
  0xf4   :  { %v136_v27 = vadd.f32 1.0, %v201_v25 }
  0xf6   :  { %v138_v28 = vmul.f32 %v136_v27, %v122_v26 }
  0xf7   :  { %v203_v29 = vpop.eup %202 }
  0xf8   :  { %v166_v30 = vpack.c.bf16 %v138_v28, %v138_v28  ;;  %v137_v32 = vadd.f32 1.0, %v203_v29 }
  0xfa   :  { %149 = vst.msk [vmem:[%s259_s3] sm:$0xf] %vm148_vm2, %v166_v30  ;;  %v139_v33 = vmul.f32 %v137_v32, %v123_v31 }
  0xfc   :  { %v167_v34 = vpack.c.bf16 %v139_v33, %v139_v33 }
  0xfe   :  { %150 = vst.msk [vmem:[%s259_s3 + $0x4] sm:$0xf] %vm148_vm2, %v167_v34 }

// kernel: whisper_classifier_forward.5
= control target key start
LH: loop header
LB: loop body
LE: loop exit
PB: predicated region body
PF: predicated region fallthrough
CT: control target
= control target key end

     0   :  { %s2331_s27 = smov 0   ;;  %s2333_s28 = smov 0   ;;  %s2638_s0 = inlined_call_operand.vmem [shape: bf16[2,8,32], index: 0, kind: input, shape index: {}]   ;;  %s2639_s1 = inlined_call_operand.vmem [shape: f32[8,32], index: 1, kind: input, shape index: {}]   ;;  %s2640_s2 = inlined_call_operand.vmem [shape: f32[2,1,32], index: 2, kind: input, shape index: {}]   ;;  %s2641_s3 = inlined_call_operand.vmem [shape: f32[2,1,32], index: 3, kind: input, shape index: {}]   ;;  %s2642_s4 = inlined_call_operand.vmem [shape: bf16[2,32,96], index: 4, kind: input, shape index: {}]   ;;  %s2643_s5 = inlined_call_operand.vmem [shape: f32[2,1,96], index: 5, kind: input, shape index: {}]   ;;  %s2644_s6 = inlined_call_operand.vmem [shape: bf16[2,32,32], index: 6, kind: input, shape index: {}]   ;;  %s2645_s7 = inlined_call_operand.vmem [shape: f32[2,1,32], index: 7, kind: input, shape index: {}]   ;;  %s2646_s8 = inlined_call_operand.vmem [shape: f32[2,1,32], index: 8, kind: input, shape index: {}]   ;;  %s2647_s9 = inlined_call_operand.vmem [shape: f32[2,1,32], index: 9, kind: input, shape index: {}]   ;;  %s2648_s10 = inlined_call_operand.vmem [shape: bf16[2,32,64], index: 10, kind: input, shape index: {}]   ;;  %s2649_s11 = inlined_call_operand.vmem [shape: f32[2,1,64], index: 11, kind: input, shape index: {}]   ;;  %s2650_s12 = inlined_call_operand.vmem [shape: bf16[2,64,32], index: 12, kind: input, shape index: {}]   ;;  %s2651_s13 = inlined_call_operand.vmem [shape: f32[2,1,32], index: 13, kind: input, shape index: {}]   ;;  %s2652_s14 = inlined_call_operand.vmem [shape: f32[1,32], index: 14, kind: input, shape index: {}]   ;;  %s2653_s15 = inlined_call_operand.vmem [shape: f32[1,32], index: 15, kind: input, shape index: {}]   ;;  %s2654_s16 = inlined_call_operand.vmem [shape: f32[32,128], index: 16, kind: input, shape index: {}]   ;;  %s2655_s17 = inlined_call_operand.vmem [shape: f32[1,128], index: 17, kind: input, shape index: {}]   ;;  %s2656_s18 = inlined_call_operand.vmem [shape: f32[2,1,128], index: 18, kind: output, shape index: {}]  }
   0x1   :  { %2662 = sst [smem:[#allocation9_spill]] %s2638_s0  ;;  %s2335_s29 = smov 0  }
   0x2   :  { %2663 = sst [smem:[#allocation10_spill]] %s2639_s1  ;;  %s2337_s30 = smov 0  }
   0x3   :  { %2664 = sst [smem:[#allocation11_spill]] %s2640_s2  ;;  %s2339_s0 = smov 0  }
   0x4   :  { %2665 = sst [smem:[#allocation12_spill]] %s2642_s4 }
   0x5   :  { %2666 = sst [smem:[#allocation13_spill]] %s2644_s6 }
   0x6   :  { %2667 = sst [smem:[#allocation14_spill]] %s2650_s12 }
   0x7   :  { %2668 = sst [smem:[#allocation15_spill]] %s2651_s13 }
   0x8   :  { %2669 = sst [smem:[#allocation16_spill]] %s2652_s14 }
   0x9   :  { %2670 = sst [smem:[#allocation17_spill]] %s2653_s15 }
   0xa   :  { %2671 = sst [smem:[#allocation18_spill]] %s2654_s16 }
   0xb   :  { %2672 = sst [smem:[#allocation19_spill]] %s2655_s17 }
   0xc   :  { %2673 = sst [smem:[#allocation20_spill]] %s2656_s18 }
   0xd LB: > { %2674 = sst [smem:[#allocation3_spill]] %s2206_s27  ;;  %s37_s19 = sadd.s32 1, %s2214_s29  ;;  %s2222_s0 = sphi %s2339_s0, %s28_s0   ;;  %s2218_s30 = sphi %s2337_s30, %s2707_s30   ;;  %s2214_s29 = sphi %s2335_s29, %s2706_s29   ;;  %s2210_s28 = sphi %s2333_s28, %s2705_s28   ;;  %s2206_s27 = sphi %s2331_s27, %s2704_s27  }
   0xe   : > { %2675 = sst [smem:[#allocation4_spill]] %s2214_s29  ;;  %s40_s1 = sadd.s32 1, %s2218_s30 }
   0xf   : > { %2676 = sst [smem:[#allocation5_spill]] %s2218_s30  ;;  %p38_p0 = scmp.ge.s32.totalorder %s37_s19, 2 }
  0x10   : > { %2677 = sst [smem:[#allocation6_spill]] %s2222_s0  ;;  %p1912_p1 = scmp.ge.s32.totalorder %s2222_s0, 1 }
  0x11   : > { %p627_p2 = scmp.lt.s32.totalorder %s2222_s0, 5  ;;  %s2709_s19 = smov (%p38_p0, %s37_s19), 0 }
  0x12   : > { %2678 = sst [smem:[#allocation7_spill]] %s2709_s19  ;;  %s2711_s1 = smov (!%p38_p0, %s40_s1), %s2218_s30 }
  0x13   : > { %p628_p3 = pnand %p1912_p1, %p627_p2  ;;  %p42_p4 = scmp.ge.s32.totalorder %s2711_s1, 2 }
  0x14   : > { %p722_p5 = scmp.lt.s32.totalorder (!%p628_p3), %s2210_s28, 1  ;;  %p726_p6 = scmp.lt.s32.totalorder (!%p628_p3), %s2206_s27, 1 }
  0x15   : > { %s2713_s1 = smov (%p42_p4, %s2711_s1), 0  ;;  %631 = sbr.rel (%p628_p3) target bundleno = 3107 (0xc23), region = 92 }
  0x16   : > { %2679 = sst [smem:[#allocation8_spill]] %s2713_s1 }
  0x17   : > { %s2681_s26 = sld [smem:[#allocation9_spill]] (!%p628_p3) }
  0x18   : > { %s2683_s4 = sld [smem:[#allocation12_spill]] (!%p628_p3) }
  0x19   : > { %s2684_s6 = sld [smem:[#allocation13_spill]] (!%p628_p3) }
  0x1a   : > { %s2715_s28 = smov (!%p722_p5, %s2210_s28), 1  ;;  %s2685_s15 = sld [smem:[#allocation15_spill]] }
  0x1b   : > { %s2367_s20 = scalar_select %p726_p6, %s2206_s27, 1 }
  0x1c   : > { %s1913_s21 = sshll.u32 %s2715_s28, 2  ;;  %s2687_s12 = sld [smem:[#allocation3_spill]] }
  0x1d   : > { %s725_s1 = scalar_lea.vmem %s2681_s26, %s1913_s21  ;;  %s1960_s16 = sshll.u32 %s2367_s20, 4 }
  0x1e   : > { %s2389_s13 = scalar_lea.vmem %s2683_s4, %s1960_s16  ;;  %s753_s14 = scalar_lea.vmem %s2647_s9, %s2367_s20 }
  0x1f   : > { %s2398_s25 = scalar_lea.vmem %s2684_s6, %s1960_s16  ;;  %s2415_s2 = scalar_lea.vmem %s2648_s10, %s1960_s16 }
  0x20   : > { %s761_s23 = scalar_lea.vmem %s2649_s11, %s2367_s20  ;;  %s1963_s4 = sshll.u32 %s2367_s20, 5 }
  0x21   : > { %s769_s6 = scalar_lea.vmem %s2685_s15, %s2367_s20  ;;  %s2686_s26 = sld [smem:[#allocation14_spill]] }
  0x22   : > { %p1922_p7 = scmp.ne.s32.totalorder %s2687_s12, 0 }
  0x23   : > { %s2688_s27 = sld [smem:[#allocation10_spill]] (!%p1922_p7) }
  0x24   : > { %777 = sbr.rel (%p1922_p7) target bundleno = 47 (0x2f), region = 96 }
  0x27   : > { %s2429_s18 = scalar_lea.vmem %s2686_s26, %s1963_s4 }
  0x29   : > { %v778_v0 = vld [vmem:[%s725_s1] sm:$0xf]  ;;  %vm782_vm0 = vcmask 261120  }
  0x2a   : > { %v780_v1 = vld [vmem:[%s2688_s27] sm:$0xff]  ;;  %v779_v2 = vunpack.c.l.bf16 %v778_v0 }
  0x2c   : > { %v781_v3 = vadd.f32 %v780_v1, %v779_v2 }
  0x2e   : > { %783 = vst.msk [vmem:[#allocation2] sm:$0xff] %vm782_vm0, %v781_v3 }
  0x2f PF: > { %vm787_vm1 = vcmask 261120   ;;  %v2146_v11 = vld [vmem:[%s2389_s13 + $0x8] sm:$0xff]   ;;  %v2224_v12 = vmov 0.0   ;;  %vm2225_vm2 = vmmov 0   ;;  %v2147_v13 = vld [vmem:[%s2389_s13] sm:$0xff]   ;;  %s2689_s15 = sld [smem:[#allocation11_spill]]  ;;  %s2691_s24 = scalar_lea.vmem %s2641_s3, %s2367_s20 }
  0x30   : > { %1999 = vmatprep.subr.bf16.mxu0 %v2224_v12  ;;  %2003 = vmatprep.mubr.msk.bf16.mxu0 %vm2225_vm2, %v2224_v12  ;;  %v1924_v20 = vld [vmem:[%s2691_s24] ss:$0 sm:$0xff]  ;;  %s2692_s30 = scalar_lea.vmem %s2643_s5, %s2367_s20  ;;  %s2226_s17 = smov 104   ;;  %vm893_vm3 = vcmask 64512   ;;  %vm1137_vm4 = vcmask 1043456   ;;  %vm1338_vm5 = vcmask 130048  }
  0x31   : > { %2000 = vmatpush3.bf16.msra.mxu0 %v2146_v11  ;;  %2007 = vmatprep.subr.bf16.mxu1 %v2224_v12  ;;  %v1925_v24 = vld [vmem:[%s2692_s30] ss:$0 sm:$0xff]  ;;  %s2227_s19 = smov 120   ;;  %s2228_s12 = smov 112   ;;  %vm1340_vm6 = vcmask 195584   ;;  %vm1549_vm7 = vcmask 523264  }
  0x32   : > { %2001 = vmatprep.subr.bf16.mxu0 %v2224_v12  ;;  %2009 = vmatprep.mubr.msk.bf16.mxu1 %vm2225_vm2, %v2224_v12  ;;  %s2229_s16 = smov 96   ;;  %s2230_s0 = smov 64  }
  0x33   : > { %s2231_s27 = smov 8   ;;  %s2232_s4 = smov 16  }
  0x34   : > { %s2233_s1 = smov 24   ;;  %s2694_s24 = scalar_lea.vmem %s2646_s8, %s2367_s20 }
  0x35   : > { %v2435_v4 = vld [vmem:[#allocation2] sm:$0xff]  ;;  %2002 = vmatpush3.bf16.msra.mxu0 %v2147_v13  ;;  %s2690_s13 = scalar_lea.vmem %s2689_s15, %s2367_s20 }
  0x36   : > { %v788_v5 = vsel %vm787_vm1, %v2435_v4, 0.0  ;;  %2013 = vmatprep.subr.bf16.mxu0 %v2224_v12  ;;  %v1923_v18 = vld [vmem:[%s2690_s13] ss:$0 sm:$0xff]  ;;  %s2693_s13 = scalar_lea.vmem %s2645_s7, %s2367_s20 }
  0x37   : > { %789 = vadd.xlane.f32.xlu0 %v788_v5 }
  0xc0   : > { %v790_v6 = vpop.xlane.xlu0 %789 }
  0xc1   : > { %v792_v7 = vmul.f32 0.03125, %v790_v6 }
  0xc3   : > { %v793_v8 = vsub.f32 %v2435_v4, %v792_v7 }
  0xc5   : > { %v794_v9 = vmul.f32 %v793_v8, %v793_v8 }
  0xc7   : > { %v795_v10 = vsel %vm787_vm1, %v794_v9, 0.0 }
  0xc8   : > { %796 = vadd.xlane.f32.xlu0 %v795_v10 }
 0x151   : > { %v797_v14 = vpop.xlane.xlu0 %796 }
 0x152   : > { %v798_v15 = vmul.f32 0.03125, %v797_v14 }
 0x154   : > { %v799_v16 = vadd.f32 1e-05, %v798_v15 }
 0x156   : > { %2156 = vrsqrt.f32 %v799_v16 }
 0x163   : > { %v2157_v17 = vpop.eup %2156 }
 0x164   : > { %v801_v19 = vmul.f32 %v2157_v17, %v793_v8 }
 0x166   : > { %v808_v21 = vmul.f32 %v1923_v18, %v801_v19 }
 0x168   : > { %v815_v22 = vadd.f32 %v1924_v20, %v808_v21 }
 0x16a   : > { %v816_v23 = vpack.c.bf16 %v815_v22, %v815_v22 }
 0x16c   : > { %2004 = vmatmul.mubr.msk.bf16.vlgmr.msra.gmra.mxu0 %vm787_vm1, %v816_v23 }
 0x16d   : > { %2015 = vmatprep.mubr.msk.bf16.mxu0 %vm2225_vm2, %v2224_v12 }
 0x22c   : > { %v877_v25 = vpop.f32.mrf.mxu0 }
 0x22d   : > { %v878_v26 = vadd.f32 %v1925_v24, %v877_v25 }
 0x22e   : > { %v2005_v27 = vpop.f32.mrf.mxu0 }
 0x22f   : > { %v2469_v28 = vpack.c.bf16 %v878_v26, %v878_v26 }
 0x230   : > { %v880_v29 = vpop.f32.mrf.mxu0 }
 0x231   : > { %889 = vrot.lane.b32.xlu0 %v2469_v28, %s2226_s17  ;;  %885 = vrot.lane.b32.xlu1 %v2469_v28, %s2227_s19  ;;  %s2696_s17 = sld [smem:[#allocation3_spill]] }
 0x232   : > { %v2006_v30 = vpop.f32.mrf.mxu0 }
 0x235   : > { %887 = vrot.lane.b32.xlu1 %v2469_v28, %s2228_s12 }
 0x237   : > { %p1953_p8 = scmp.ne.s32.totalorder %s2696_s17, 1 }
 0x238   : > { %s2697_s19 = sld [smem:[#allocation18_spill]] (!%p1953_p8) }
 0x239   : > { %891 = vrot.lane.b32.xlu1 %v2469_v28, %s2229_s16 }
 0x2a3   : > { %v2475_v31 = vpop.permute.xlu1 %885  ;;  %v2481_v33 = vpop.permute.xlu0 %889 }
 0x2a4   : > { %940 = vrot.lane.b32.xlu1 %v2475_v31, %s2229_s16 }
 0x2a7   : > { %v2478_v32 = vpop.permute.xlu1 %887 }
 0x2a8   : > { %988 = vrot.lane.b32.xlu1 %v2478_v32, %s2229_s16 }
 0x2ab   : > { %v892_v34 = vpop.permute.xlu1 %891 }
 0x2ac   : > { %1036 = vrot.lane.b32.xlu1 %v2481_v33, %s2229_s16  ;;  %v898_v35 = vsel %vm893_vm3, %v892_v34, 0 }
 0x2ad   : > { %2008 = vmatpush3.bf16.xpose.msra.mxu1 %v898_v35 }
 0x2ae   : > { %2019 = vmatprep.subr.bf16.mxu1 %v2224_v12 }
 0x2b4   : > { %2010 = vmatmul.mubr.msk.bf16.vlgmr.msra.gmra.mxu1 %vm893_vm3, %v2469_v28 }
 0x2b5   : > { %2021 = vmatprep.mubr.msk.bf16.mxu1 %vm2225_vm2, %v2224_v12 }
 0x316   : > { %v941_v36 = vpop.permute.xlu1 %940 }
 0x317   : > { %v946_v37 = vsel %vm893_vm3, %v941_v36, 0 }
 0x318   : > { %2014 = vmatpush3.bf16.xpose.msra.mxu0 %v946_v37 }
 0x319   : > { %2025 = vmatprep.subr.bf16.mxu0 %v2224_v12 }
 0x31a   : > { %v989_v38 = vpop.permute.xlu1 %988 }
 0x31b   : > { %v994_v39 = vsel %vm893_vm3, %v989_v38, 0 }
 0x31c   : > { %2020 = vmatpush3.bf16.xpose.msra.mxu1 %v994_v39 }
 0x31d   : > { %2031 = vmatprep.subr.bf16.mxu1 %v2224_v12 }
 0x31e   : > { %v1037_v40 = vpop.permute.xlu1 %1036 }
 0x31f   : > { %v1042_v41 = vsel %vm893_vm3, %v1037_v40, 0  ;;  %2016 = vmatmul.mubr.msk.bf16.vlgmr.msra.gmra.mxu0 %vm893_vm3, %v2475_v31 }
 0x320   : > { %2026 = vmatpush3.bf16.xpose.msra.mxu0 %v1042_v41  ;;  %2027 = vmatprep.mubr.msk.bf16.mxu0 %vm2225_vm2, %v2224_v12 }
 0x321   : > { %2037 = vmatprep.subr.bf16.mxu0 %v2224_v12 }
 0x323   : > { %2022 = vmatmul.mubr.msk.bf16.vlgmr.msra.gmra.mxu1 %vm893_vm3, %v2478_v32 }
 0x324   : > { %2033 = vmatprep.mubr.msk.bf16.mxu1 %vm2225_vm2, %v2224_v12 }
 0x327   : > { %2028 = vmatmul.mubr.msk.bf16.vlgmr.msra.gmra.mxu0 %vm893_vm3, %v2481_v33 }
 0x328   : > { %2039 = vmatprep.mubr.msk.bf16.mxu0 %vm2225_vm2, %v2224_v12 }
 0x374   : > { %v934_v42 = vpop.f32.mrf.mxu1 }
 0x375   : > { %v1084_v43 = vsel %vm893_vm3, %v934_v42, -inf }
 0x376   : > { %1085 = vmax.xlane.f32.xlu1 %v1084_v43  ;;  %v2011_v44 = vpop.f32.mrf.mxu1 }
 0x378   : > { %v937_v45 = vpop.f32.mrf.mxu1 }
 0x37a   : > { %v2012_v46 = vpop.f32.mrf.mxu1 }
 0x3df   : > { %v982_v47 = vpop.f32.mrf.mxu0 }
 0x3e0   : > { %v1087_v48 = vsel %vm893_vm3, %v982_v47, -inf }
 0x3e1   : > { %1088 = vmax.xlane.f32.xlu0 %v1087_v48  ;;  %v2017_v49 = vpop.f32.mrf.mxu0  ;;  %v2148_v48 = vld [vmem:[%s2398_s25 + $0x8] sm:$0xff]  }
 0x3e2   : > { %v2149_v49 = vld [vmem:[%s2398_s25] sm:$0xff]  }
 0x3e3   : > { %v985_v50 = vpop.f32.mrf.mxu0  ;;  %v1030_v51 = vpop.f32.mrf.mxu1 }
 0x3e4   : > { %v1090_v52 = vsel %vm893_vm3, %v1030_v51, -inf }
 0x3e5   : > { %1091 = vmax.xlane.f32.xlu1 %v1090_v52  ;;  %v2018_v53 = vpop.f32.mrf.mxu0  ;;  %v2023_v54 = vpop.f32.mrf.mxu1 }
 0x3e7   : > { %v1033_v55 = vpop.f32.mrf.mxu1  ;;  %v1078_v56 = vpop.f32.mrf.mxu0 }
 0x3e8   : > { %v1093_v57 = vsel %vm893_vm3, %v1078_v56, -inf }
 0x3e9   : > { %v2024_v58 = vpop.f32.mrf.mxu1  ;;  %1094 = vmax.xlane.f32.xlu0 %v1093_v57  ;;  %v2029_v59 = vpop.f32.mrf.mxu0 }
 0x3eb   : > { %v1081_v60 = vpop.f32.mrf.mxu0 }
 0x3ed   : > { %v2030_v61 = vpop.f32.mrf.mxu0 }
 0x3f6   : > { %1132 = vrot.lane.b32.xlu1 %v2469_v28, %s2230_s0 }
 0x3ff   : > { %v1086_v62 = vpop.xlane.xlu1 %1085 }
 0x400   : > { %v1096_v63 = vsub.f32 %v934_v42, %v1086_v62 }
 0x402   : > { %v1100_v0 = vmul.f32 1.442695, %v1096_v63 }
 0x404   : > { %2158 = vpow2.f32 %v1100_v0 }
 0x411   : > { %v2159_v1 = vpop.eup %2158 }
 0x412   : > { %v1108_v2 = vsel %vm893_vm3, %v2159_v1, 0.0 }
 0x41a   : > { %1109 = vadd.xlane.f32.xlu1 %v1108_v2 }
 0x46a   : > { %v1089_v3 = vpop.xlane.xlu0 %1088 }
 0x46b   : > { %v1097_v5 = vsub.f32 %v982_v47, %v1089_v3 }
 0x46d   : > { %v1102_v6 = vmul.f32 1.442695, %v1097_v5 }
 0x46e   : > { %v1092_v7 = vpop.xlane.xlu1 %1091 }
 0x46f   : > { %2160 = vpow2.f32 %v1102_v6  ;;  %v1098_v8 = vsub.f32 %v1030_v51, %v1092_v7  ;;  %v1940_v7 = vld [vmem:[%s2693_s13] ss:$0 sm:$0xff]  ;;  %s2698_s13 = sld [smem:[#allocation16_spill]] (!%p1953_p8) }
 0x471   : > { %v1104_v9 = vmul.f32 1.442695, %v1098_v8 }
 0x472   : > { %v1133_v10 = vpop.permute.xlu1 %1132  ;;  %v1095_v11 = vpop.xlane.xlu0 %1094 }
 0x473   : > { %2162 = vpow2.f32 %v1104_v9  ;;  %v1139_v13 = vsel %vm1137_vm4, %v1133_v10, 0  ;;  %v1099_v14 = vsub.f32 %v1078_v56, %v1095_v11 }
 0x474   : > { %2032 = vmatpush3.bf16.msra.mxu1 %v1139_v13 }
 0x475   : > { %v1106_v15 = vmul.f32 1.442695, %v1099_v14  ;;  %2043 = vmatprep.subr.bf16.mxu1 %v2224_v12 }
 0x477   : > { %2164 = vpow2.f32 %v1106_v15 }
 0x47c   : > { %v2161_v16 = vpop.eup %2160 }
 0x47d   : > { %v1111_v17 = vsel %vm893_vm3, %v2161_v16, 0.0 }
 0x47e   : > { %1112 = vadd.xlane.f32.xlu0 %v1111_v17 }
 0x480   : > { %v2163_v18 = vpop.eup %2162 }
 0x481   : > { %v1114_v19 = vsel %vm893_vm3, %v2163_v18, 0.0 }
 0x482   : > { %1115 = vadd.xlane.f32.xlu1 %v1114_v19 }
 0x484   : > { %v2165_v20 = vpop.eup %2164 }
 0x485   : > { %v1117_v21 = vsel %vm893_vm3, %v2165_v20, 0.0 }
 0x486   : > { %1118 = vadd.xlane.f32.xlu0 %v1117_v21 }
 0x493   : > { %1229 = vrot.lane.b32.xlu1 %v2478_v32, %s2230_s0 }
 0x497   : > { %1277 = vrot.lane.b32.xlu1 %v2481_v33, %s2230_s0 }
 0x49c   : > { %1181 = vrot.lane.b32.xlu0 %v2475_v31, %s2230_s0 }
 0x4a3   : > { %v1110_v22 = vpop.xlane.xlu1 %1109 }
 0x4a4   : > { %2166 = vrcp.f32 %v1110_v22 }
 0x4b1   : > { %v2167_v23 = vpop.eup %2166 }
 0x4b2   : > { %v1124_v24 = vmul.f32 %v2167_v23, %v2159_v1 }
 0x4b4   : > { %v1128_v25 = vpack.c.bf16 %v1124_v24, %v1124_v24 }
 0x4b6   : > { %2034 = vmatmul.mubr.msk.bf16.vlgmr.msra.gmra.mxu1 %vm893_vm3, %v1128_v25  ;;  %v1941_v25 = vld [vmem:[%s2694_s24] ss:$0 sm:$0xff]  ;;  %s2699_s24 = sld [smem:[#allocation17_spill]] (!%p1953_p8) }
 0x4b7   : > { %2045 = vmatprep.mubr.msk.bf16.mxu1 %vm2225_vm2, %v2224_v12 }
 0x507   : > { %v1113_v26 = vpop.xlane.xlu0 %1112 }
 0x508   : > { %2168 = vrcp.f32 %v1113_v26 }
 0x50b   : > { %v1116_v27 = vpop.xlane.xlu1 %1115 }
 0x50c   : > { %2170 = vrcp.f32 %v1116_v27  ;;  %v1942_v27 = vld [vmem:[%s753_s14] ss:$0 sm:$0xff]  ;;  %s2700_s14 = sld [smem:[#allocation19_spill]] (!%p1953_p8) }
 0x50f   : > { %v1230_v28 = vpop.permute.xlu1 %1229  ;;  %v1119_v29 = vpop.xlane.xlu0 %1118 }
 0x510   : > { %v1235_v30 = vsel %vm1137_vm4, %v1230_v28, 0  ;;  %2172 = vrcp.f32 %v1119_v29 }
 0x511   : > { %2044 = vmatpush3.bf16.msra.mxu1 %v1235_v30 }
 0x512   : > { %2055 = vmatprep.subr.bf16.mxu1 %v2224_v12 }
 0x513   : > { %v1182_v31 = vpop.permute.xlu0 %1181  ;;  %v1278_v35 = vpop.permute.xlu1 %1277 }
 0x514   : > { %v1187_v32 = vsel %vm1137_vm4, %v1182_v31, 0  ;;  %v1283_v38 = vsel %vm1137_vm4, %v1278_v35, 0  ;;  %v2152_v31 = vld [vmem:[%s2429_s18 + $0x18] sm:$0xff]   ;;  %v1943_v35 = vld [vmem:[%s761_s23] ss:$0 sm:$0xff]  ;;  %s2701_s23 = sld [smem:[#allocation20_spill]] (!%p1953_p8) }
 0x515   : > { %v2169_v33 = vpop.eup %2168  ;;  %2038 = vmatpush3.bf16.msra.mxu0 %v1187_v32  ;;  %v2153_v32 = vld [vmem:[%s2429_s18 + $0x10] sm:$0xff]  }
 0x516   : > { %2049 = vmatprep.subr.bf16.mxu0 %v2224_v12  ;;  %v1125_v34 = vmul.f32 %v2169_v33, %v2161_v16  ;;  %v2154_v33 = vld [vmem:[%s2429_s18 + $0x8] sm:$0xff]  }
 0x518   : > { %v1129_v36 = vpack.c.bf16 %v1125_v34, %v1125_v34  ;;  %v2155_v34 = vld [vmem:[%s2429_s18] sm:$0xff]  }
 0x519   : > { %v2171_v37 = vpop.eup %2170 }
 0x51a   : > { %2040 = vmatmul.mubr.msk.bf16.vlgmr.msra.gmra.mxu0 %vm893_vm3, %v1129_v36  ;;  %v1126_v39 = vmul.f32 %v2171_v37, %v2163_v18  ;;  %s2702_s30 = scalar_lea.vmem (!%p1953_p8), %s2701_s23, %s2715_s28 }
 0x51b   : > { %2050 = vmatpush3.bf16.msra.mxu0 %v1283_v38  ;;  %2051 = vmatprep.mubr.msk.bf16.mxu0 %vm2225_vm2, %v2224_v12 }
 0x51c   : > { %v1130_v40 = vpack.c.bf16 %v1126_v39, %v1126_v39  ;;  %2063 = vmatprep.subr.bf16.mxu0 %v2224_v12 }
 0x51d   : > { %v2173_v41 = vpop.eup %2172 }
 0x51e   : > { %2046 = vmatmul.mubr.msk.bf16.vlgmr.msra.gmra.mxu1 %vm893_vm3, %v1130_v40  ;;  %v1127_v42 = vmul.f32 %v2173_v41, %v2165_v20  ;;  %v2150_v20 = vld [vmem:[%s2415_s2 + $0x8] sm:$0xff]  }
 0x51f   : > { %2059 = vmatprep.mubr.msk.bf16.mxu1 %vm2225_vm2, %v2224_v12  ;;  %2056 = vmatpush3.bf16.msra.mxu1 %v2148_v48 }
 0x520   : > { %v1131_v43 = vpack.c.bf16 %v1127_v42, %v1127_v42  ;;  %2057 = vmatprep.subr.bf16.mxu1 %v2224_v12 }
 0x522   : > { %2052 = vmatmul.mubr.msk.bf16.vlgmr.msra.gmra.mxu0 %vm893_vm3, %v1131_v43 }
 0x523   : > { %2067 = vmatprep.mubr.msk.bf16.mxu0 %vm2225_vm2, %v2224_v12  ;;  %2058 = vmatpush3.bf16.msra.mxu1 %v2149_v49 }
 0x524   : > { %2071 = vmatprep.subr.bf16.mxu1 %v2224_v12  ;;  %2064 = vmatpush3.bf16.msra.mxu0 %v2150_v20 }
 0x525   : > { %2065 = vmatprep.subr.bf16.mxu0 %v2224_v12 }
 0x576   : > { %v1175_v44 = vpop.f32.mrf.mxu1 }
 0x578   : > { %v2035_v45 = vpop.f32.mrf.mxu1 }
 0x57a   : > { %v1178_v46 = vpop.f32.mrf.mxu1 }
 0x57c   : > { %v2036_v47 = vpop.f32.mrf.mxu1 }
 0x5da   : > { %v1223_v50 = vpop.f32.mrf.mxu0 }
 0x5db   : > { %1326 = vrot.lane.b32.xlu0 %v1223_v50, %s2231_s27 }
 0x5dc   : > { %v2041_v51 = vpop.f32.mrf.mxu0 }
 0x5dd   : > { %v1952_v51 = vld [vmem:[%s769_s6] ss:$0 sm:$0xff] }
 0x5de   : > { %v1226_v52 = vpop.f32.mrf.mxu0  ;;  %v1271_v53 = vpop.f32.mrf.mxu1 }
 0x5df   : > { %1330 = vrot.lane.b32.xlu1 %v1271_v53, %s2232_s4 }
 0x5e0   : > { %v2042_v54 = vpop.f32.mrf.mxu0  ;;  %v2047_v55 = vpop.f32.mrf.mxu1 }
 0x5e2   : > { %v1274_v56 = vpop.f32.mrf.mxu1  ;;  %v1319_v57 = vpop.f32.mrf.mxu0 }
 0x5e3   : > { %1334 = vrot.lane.b32.xlu0 %v1319_v57, %s2233_s1 }
 0x5e4   : > { %v2048_v58 = vpop.f32.mrf.mxu1  ;;  %v2053_v59 = vpop.f32.mrf.mxu0 }
 0x5e6   : > { %v1322_v60 = vpop.f32.mrf.mxu0 }
 0x5e8   : > { %v2054_v61 = vpop.f32.mrf.mxu0 }
 0x64d   : > { %v1327_v62 = vpop.permute.xlu0 %1326 }
 0x64e   : > { %v1337_v0 = vsel %vm893_vm3, %v1175_v44, %v1327_v62 }
 0x651   : > { %v1331_v63 = vpop.permute.xlu1 %1330 }
 0x652   : > { %v1339_v1 = vsel %vm1338_vm5, %v1337_v0, %v1331_v63 }
 0x655   : > { %v1335_v2 = vpop.permute.xlu0 %1334 }
 0x656   : > { %v1341_v3 = vsel %vm1340_vm6, %v1339_v1, %v1335_v2 }
 0x657   : > { %v1342_v5 = vpack.c.bf16 %v1341_v3, %v1341_v3 }
 0x659   : > { %2060 = vmatmul.mubr.msk.bf16.vlgmr.msra.gmra.mxu1 %vm787_vm1, %v1342_v5 }
 0x65a   : > { %2079 = vmatprep.mubr.msk.bf16.mxu1 %vm2225_vm2, %v2224_v12  ;;  %2072 = vmatpush3.bf16.msra.mxu1 %v2152_v31 }
 0x65b   : > { %2073 = vmatprep.subr.bf16.mxu1 %v2224_v12 }
 0x65e   : > { %2074 = vmatpush3.bf16.msra.mxu1 %v2153_v32 }
 0x65f   : > { %2075 = vmatprep.subr.bf16.mxu1 %v2224_v12 }
 0x662   : > { %2076 = vmatpush3.bf16.msra.mxu1 %v2154_v33 }
 0x663   : > { %2077 = vmatprep.subr.bf16.mxu1 %v2224_v12 }
 0x666   : > { %2078 = vmatpush3.bf16.msra.mxu1 %v2155_v34 }
 0x719   : > { %v1396_v6 = vpop.f32.mrf.mxu1 }
 0x71a   : > { %v1402_v8 = vadd.f32 %v1396_v6, %v2435_v4  ;;  %v2151_v4 = vld [vmem:[%s2415_s2] sm:$0xff]  }
 0x71b   : > { %v2061_v9 = vpop.f32.mrf.mxu1  ;;  %2066 = vmatpush3.bf16.msra.mxu0 %v2151_v4 }
 0x71c   : > { %v1410_v10 = vadd.f32 %v1940_v7, %v1402_v8 }
 0x71d   : > { %v1399_v11 = vpop.f32.mrf.mxu1 }
 0x71e   : > { %v1413_v13 = vsel %vm787_vm1, %v1410_v10, 0.0 }
 0x71f   : > { %1414 = vadd.xlane.f32.xlu1 %v1413_v13  ;;  %v2062_v14 = vpop.f32.mrf.mxu1 }
 0x7a8   : > { %v1415_v15 = vpop.xlane.xlu1 %1414 }
 0x7a9   : > { %v1416_v16 = vmul.f32 0.03125, %v1415_v15 }
 0x7ab   : > { %v1417_v17 = vsub.f32 %v1410_v10, %v1416_v16 }
 0x7ad   : > { %v1418_v18 = vmul.f32 %v1417_v17, %v1417_v17 }
 0x7af   : > { %v1419_v19 = vsel %vm787_vm1, %v1418_v18, 0.0 }
 0x7b0   : > { %1420 = vadd.xlane.f32.xlu0 %v1419_v19 }
 0x839   : > { %v1421_v21 = vpop.xlane.xlu0 %1420 }
 0x83a   : > { %v1422_v22 = vmul.f32 0.03125, %v1421_v21 }
 0x83c   : > { %v1423_v23 = vadd.f32 1e-05, %v1422_v22 }
 0x83e   : > { %2174 = vrsqrt.f32 %v1423_v23 }
 0x84b   : > { %v2175_v24 = vpop.eup %2174 }
 0x84c   : > { %v1425_v26 = vmul.f32 %v2175_v24, %v1417_v17 }
 0x84e   : > { %v1432_v28 = vmul.f32 %v1941_v25, %v1425_v26 }
 0x850   : > { %v1439_v29 = vadd.f32 %v1942_v27, %v1432_v28 }
 0x852   : > { %v1440_v30 = vpack.c.bf16 %v1439_v29, %v1439_v29 }
 0x854   : > { %2068 = vmatmul.mubr.msk.bf16.vlgmr.msra.gmra.mxu0 %vm787_vm1, %v1440_v30 }
 0x914   : > { %v1501_v36 = vpop.f32.mrf.mxu0 }
 0x915   : > { %v1502_v37 = vadd.f32 %v1943_v35, %v1501_v36 }
 0x916   : > { %v2069_v38 = vpop.f32.mrf.mxu0 }
 0x917   : > { %v1508_v39 = vmul.f32 0.044715, %v1502_v37  ;;  %v1507_v12 = vmul.f32 0.5, %v1502_v37 }
 0x918   : > { %v1504_v40 = vpop.f32.mrf.mxu0 }
 0x919   : > { %v1509_v41 = vmul.f32 %v1508_v39, %v1502_v37 }
 0x91a   : > { %v2070_v42 = vpop.f32.mrf.mxu0 }
 0x91b   : > { %v1510_v43 = vmul.f32 %v1509_v41, %v1502_v37 }
 0x91d   : > { %v1511_v44 = vadd.f32 %v1510_v43, %v1502_v37 }
 0x91f   : > { %v1512_v45 = vmul.f32 0.7978846, %v1511_v44 }
 0x921   : > { %2176 = vtanh.f32 %v1512_v45 }
 0x92e   : > { %v2177_v46 = vpop.eup %2176 }
 0x92f   : > { %v1514_v47 = vadd.f32 1.0, %v2177_v46 }
 0x931   : > { %v1515_v48 = vmul.f32 %v1514_v47, %v1507_v12 }
 0x933   : > { %v1516_v49 = vpack.c.bf16 %v1515_v48, %v1515_v48 }
 0x935   : > { %2080 = vmatmul.mubr.msk.bf16.vlgmr.msra.gmra.mxu1 %vm1549_vm7, %v1516_v49 }
 0x9f5   : > { %v1587_v50 = vpop.f32.mrf.mxu1 }
 0x9f6   : > { %v1593_v52 = vadd.f32 %v1587_v50, %v1410_v10 }
 0x9f7   : > { %v2081_v53 = vpop.f32.mrf.mxu1  ;;  %1606 = sbr.rel (%p1953_p8) target bundleno = 3107 (0xc23), region = 100 }
 0x9f8   : > { %v1601_v54 = vadd.f32 %v1952_v51, %v1593_v52 }
 0x9f9   : > { %v1590_v55 = vpop.f32.mrf.mxu1 }
 0x9fa   : > { %1602 = vst.msk [vmem:[#allocation2] sm:$0xff] %vm787_vm1, %v1601_v54 }
 0x9fb   : > { %v2082_v56 = vpop.f32.mrf.mxu1 }
 0x9fc   : > { %v1609_v57 = vsel %vm787_vm1, %v1601_v54, 0.0  ;;  %v1648_v63 = vld [vmem:[%s2697_s19 + $0x18] sm:$0xff]  ;;  %v2234_v0 = vmov 0.0   ;;  %v1647_v1 = vld [vmem:[%s2697_s19 + $0x10] sm:$0xff]  ;;  %vm2235_vm8 = vmmov 0   ;;  %v1646_v2 = vld [vmem:[%s2697_s19 + $0x8] sm:$0xff] }
 0x9fd   : > { %1610 = vadd.xlane.f32.xlu0 %v1609_v57  ;;  %2083 = vmatprep.subr.mxu0 %v2234_v0  ;;  %v1645_v3 = vld [vmem:[%s2697_s19] sm:$0xff] }
 0x9fe   : > { %2091 = vmatprep.mubr.msk.f32.mxu0 %vm2235_vm8, %v2234_v0  ;;  %2084 = vmatpush3.msra.mxu0 %v1648_v63  ;;  %v1954_v9 = vld [vmem:[%s2698_s13] ss:$0 sm:$0xff] }
 0x9ff   : > { %2085 = vmatprep.subr.mxu0 %v2234_v0  ;;  %v1955_v11 = vld [vmem:[%s2699_s24] ss:$0 sm:$0xff] }
 0xa00   : > { %2086 = vmatpush3.msra.mxu0 %v1647_v1  ;;  %v1649_v22 = vld [vmem:[%s2700_s14] sm:$0x1] }
 0xa01   : > { %2087 = vmatprep.subr.mxu0 %v2234_v0 }
 0xa02   : > { %2088 = vmatpush3.msra.mxu0 %v1646_v2 }
 0xa03   : > { %2089 = vmatprep.subr.mxu0 %v2234_v0 }
 0xa04   : > { %2090 = vmatpush3.msra.mxu0 %v1645_v3 }
 0xa86   : > { %v1611_v58 = vpop.xlane.xlu0 %1610 }
 0xa87   : > { %v1612_v59 = vmul.f32 0.03125, %v1611_v58 }
 0xa89   : > { %v1613_v60 = vsub.f32 %v1601_v54, %v1612_v59 }
 0xa8b   : > { %v1614_v61 = vmul.f32 %v1613_v60, %v1613_v60 }
 0xa8d   : > { %v1615_v62 = vsel %vm787_vm1, %v1614_v61, 0.0 }
 0xa8e   : > { %1616 = vadd.xlane.f32.xlu0 %v1615_v62 }
 0xb17   : > { %v1617_v5 = vpop.xlane.xlu0 %1616 }
 0xb18   : > { %v1618_v6 = vmul.f32 0.03125, %v1617_v5 }
 0xb1a   : > { %v1619_v7 = vadd.f32 1e-05, %v1618_v6 }
 0xb1c   : > { %2178 = vrsqrt.f32 %v1619_v7 }
 0xb29   : > { %v2179_v8 = vpop.eup %2178 }
 0xb2a   : > { %v1621_v10 = vmul.f32 %v2179_v8, %v1613_v60 }
 0xb2c   : > { %v1628_v13 = vmul.f32 %v1954_v9, %v1621_v10 }
 0xb2e   : > { %v1635_v14 = vadd.f32 %v1955_v11, %v1628_v13 }
 0xb30   : > { %v1636_v15 = vsel %vm787_vm1, %v1635_v14, 0.0 }
 0xb31   : > { %v1637_v16 = vrot.slane %v1636_v15, 4 }
 0xb33   : > { %v1638_v17 = vadd.f32 %v1637_v16, %v1636_v15 }
 0xb35   : > { %v1639_v18 = vrot.slane %v1638_v17, 2 }
 0xb37   : > { %v1640_v19 = vadd.f32 %v1639_v18, %v1638_v17 }
 0xb39   : > { %v1641_v20 = vrot.slane %v1640_v19, 1 }
 0xb3b   : > { %v1642_v4 = vadd.f32 %v1641_v20, %v1640_v19 }
 0xb3d   : > { %v1644_v21 = vmul.f32 0.125, %v1642_v4 }
 0xb3f   : > { %2092 = vmatmul.mubr.msk.f32.vlgmr.msra.gmra.mxu0 %vm787_vm1, %v1644_v21 }
 0xbff   : > { %v1719_v23 = vpop.f32.mrf.mxu0 }
 0xc00   : > { %v1720_v24 = vadd.f32 %v1719_v23, %v1649_v22 }
 0xc01   : > { %v2093_v25 = vpop.f32.mrf.mxu0 }
 0xc02   : > { %v1957_v26 = vmul.f32 -1.442695, %v1720_v24 }
 0xc04   : > { %2180 = vpow2.f32 %v1957_v26 }
 0xc11   : > { %v2181_v27 = vpop.eup %2180 }
 0xc12   : > { %v1726_v28 = vadd.f32 1.0, %v2181_v27 }
 0xc14   : > { %2182 = vrcp.f32 %v1726_v28 }
 0xc21   : > { %v2183_v29 = vpop.eup %2182 }
 0xc22   : > { %1729 = vst [vmem:[%s2702_s30] sm:$0x1] %v2183_v29 }
 0xc23 PF: > { %s2703_s17 = sld [smem:[#allocation6_spill]] }
 0xc24   : > { %s2704_s27 = sld [smem:[#allocation4_spill]] }
 0xc25   : > { %s2705_s28 = sld [smem:[#allocation5_spill]] }
 0xc26   : > { %s2706_s29 = sld [smem:[#allocation7_spill]] }
 0xc27   : > { %s2707_s30 = sld [smem:[#allocation8_spill]] }
 0xc29   : > { %s28_s0 = sadd.s32 1, %s2703_s17  }
 0xc2a   : > { %p25_p9 = scmp.ge.s32.totalorder %s28_s0, 6  }
 0xc2c   :  { %27 = sbr.rel (!%p25_p9) target bundleno = 13 (0xd), region = 166 }

</bundles_post_ra>
